<compile_context>
chip_gen: v5e
topology: v5e:2x2
jax: 0.10.0
libtpu: 0.0.40
codegen_flags: <defaults>
</compile_context>

<pallas_src>
import math

import jax
import jax.numpy as jnp
from jax.experimental import pallas as pl
from jax.experimental.pallas import tpu as pltpu

# ---------------------------------------------------------------- config
B, S, D = 2, 8, 32          # batch, seq, embed dim
H = 4                       # num heads
HD = D // H                 # head dim
FF = 64                     # feedforward dim
NUM_LAYERS = 2
EPS = 1e-5
BS = B * S


# ---------------------------------------------------------------- kernel
def _layernorm(x, g, b):
    mu = jnp.mean(x, axis=-1, keepdims=True)
    var = jnp.mean((x - mu) ** 2, axis=-1, keepdims=True)   # biased var, like torch
    return (x - mu) * jax.lax.rsqrt(var + EPS) * g + b


def encoder_kernel(x_ref,
                   wqkv_ref, bqkv_ref,      # (L, D, 3D), (L, 1, 3D)
                   wo_ref,                  # (L, D, D)
                   w1_ref, b1_ref,          # (L, D, FF), (L, 1, FF)
                   w2_ref,                  # (L, FF, D)
                   vec_ref,                 # (L, 6, D): rows = bo, b2, g1, be1, g2, be2
                   gnb_ref,                 # (2, D):    rows = g, b of final norm
                   out_ref):
    x = x_ref[...].astype(jnp.float32)                     # (BS, D)
    scale = 1.0 / math.sqrt(HD)

    for l in range(NUM_LAYERS):                            # static unroll over layers
        wqkv = wqkv_ref[l]                                 # (D, 3D)
        bqkv = bqkv_ref[l]                                 # (1, 3D)
        wo = wo_ref[l]                                     # (D, D)
        w1 = w1_ref[l]                                     # (D, FF)
        b1 = b1_ref[l]                                     # (1, FF)
        w2 = w2_ref[l]                                     # (FF, D)
        vec = vec_ref[l]                                   # (6, D)
        bo, b2 = vec[0:1, :], vec[1:2, :]
        g1, be1 = vec[2:3, :], vec[3:4, :]
        g2, be2 = vec[4:5, :], vec[5:6, :]

        # --- fused QKV projection: one MXU matmul ---
        qkv = jnp.dot(x, wqkv, preferred_element_type=jnp.float32) + bqkv   # (BS, 3D)
        qkv3 = qkv.reshape(B, S, 3 * D)                                     # sublane split only

        # --- per-head attention; head-concat replaced by Wo-row accumulation ---
        attn = jnp.zeros((BS, D), jnp.float32)
        for h in range(H):
            sl_q = slice(h * HD, (h + 1) * HD)
            sl_k = slice(D + h * HD, D + (h + 1) * HD)
            sl_v = slice(2 * D + h * HD, 2 * D + (h + 1) * HD)
            qh = qkv3[:, :, sl_q]                          # (B, S, HD)
            kh = qkv3[:, :, sl_k]
            vh = qkv3[:, :, sl_v]
            s = jnp.einsum('bqd,bkd->bqk', qh, kh,
                           preferred_element_type=jnp.float32) * scale
            s = s - jnp.max(s, axis=-1, keepdims=True)
            p = jnp.exp(s)
            p = p * pl.reciprocal(jnp.sum(p, axis=-1, keepdims=True), approx=False)
            ctx = jnp.einsum('bqk,bkd->bqd', p, vh,
                             preferred_element_type=jnp.float32)            # (B, S, HD)
            ctx2 = ctx.reshape(BS, HD)                                      # sublane merge only
            attn = attn + jnp.dot(ctx2, wo[h * HD:(h + 1) * HD, :],
                                  preferred_element_type=jnp.float32)
        attn = attn + bo

        # --- residual + LayerNorm 1 ---
        x1 = _layernorm(x + attn, g1, be1)

        # --- feed-forward ---
        hid = jnp.maximum(
            jnp.dot(x1, w1, preferred_element_type=jnp.float32) + b1, 0.0)  # (BS, FF)
        ff = jnp.dot(hid, w2, preferred_element_type=jnp.float32) + b2      # (BS, D)

        # --- residual + LayerNorm 2 ---
        x = _layernorm(x1 + ff, g2, be2)

    # --- optional final LayerNorm of the Encoder ---
    g, b = gnb_ref[0:1, :], gnb_ref[1:2, :]
    out_ref[...] = _layernorm(x, g, b).astype(out_ref.dtype)


# ---------------------------------------------------------------- wrapper
_VMEM = pl.BlockSpec(memory_space=pltpu.MemorySpace.VMEM)


@jax.jit
def encoder_forward(x, packed):
    x2 = x.reshape(BS, D)
    out2 = pl.pallas_call(
        encoder_kernel,
        out_shape=jax.ShapeDtypeStruct((BS, D), x.dtype),
        in_specs=[_VMEM] * 9,
        out_specs=_VMEM,
    )(x2, packed['wqkv'], packed['bqkv'], packed['wo'],
      packed['w1'], packed['b1'], packed['w2'],
      packed['vec'], packed['gnb'])
    return out2.reshape(B, S, D)


def pack_params(layer_params, norm_params):
    """Stack per-layer params along a leading L axis; fuse QKV; pack tiny vectors."""
    wqkv = jnp.stack([jnp.concatenate([p['wq'], p['wk'], p['wv']], axis=1)
                      for p in layer_params])                       # (L, D, 3D)
    bqkv = jnp.stack([jnp.concatenate([p['bq'], p['bk'], p['bv']], axis=1)
                      for p in layer_params])                       # (L, 1, 3D)
    wo = jnp.stack([p['wo'] for p in layer_params])                 # (L, D, D)
    w1 = jnp.stack([p['w1'] for p in layer_params])                 # (L, D, FF)
    b1 = jnp.stack([p['b1'] for p in layer_params])                 # (L, 1, FF)
    w2 = jnp.stack([p['w2'] for p in layer_params])                 # (L, FF, D)
    vec = jnp.stack([jnp.concatenate([p['bo'], p['b2'], p['g1'],
                                      p['be1'], p['g2'], p['be2']], axis=0)
                     for p in layer_params])                        # (L, 6, D)
    gnb = jnp.concatenate([norm_params['g'], norm_params['b']], axis=0)   # (2, D)
    return dict(wqkv=wqkv, bqkv=bqkv, wo=wo, w1=w1, b1=b1, w2=w2, vec=vec, gnb=gnb)


# ---------------------------------------------------------------- params
def make_layer_params(key):
    ks = jax.random.split(key, 16)

    def lin(k, fan_in, fan_out):
        bound = math.sqrt(6.0 / (fan_in + fan_out))
        return jax.random.uniform(k, (fan_in, fan_out), jnp.float32, -bound, bound)

    def small(k, n):
        return 0.02 * jax.random.normal(k, (1, n), jnp.float32)

    return {
        'wq': lin(ks[0], D, D), 'wk': lin(ks[1], D, D), 'wv': lin(ks[2], D, D),
        'bq': small(ks[3], D), 'bk': small(ks[4], D), 'bv': small(ks[5], D),
        'wo': lin(ks[6], D, D), 'bo': small(ks[7], D),
        'w1': lin(ks[8], D, FF), 'b1': small(ks[9], FF),
        'w2': lin(ks[10], FF, D), 'b2': small(ks[11], D),
        'g1': 1.0 + small(ks[12], D), 'be1': small(ks[13], D),
        'g2': 1.0 + small(ks[14], D), 'be2': small(ks[15], D),
    }


# ---------------------------------------------------------------- pure-JAX reference
def ref_layer(x, p):
    q = x @ p['wq'] + p['bq']
    k = x @ p['wk'] + p['bk']
    v = x @ p['wv'] + p['bv']
    qh = q.reshape(B, S, H, HD)
    kh = k.reshape(B, S, H, HD)
    vh = v.reshape(B, S, H, HD)
    s = jnp.einsum('bqhd,bkhd->bhqk', qh, kh) / math.sqrt(HD)
    a = jax.nn.softmax(s, axis=-1)
    ctx = jnp.einsum('bhqk,bkhd->bqhd', a, vh).reshape(B, S, D)
    attn = ctx @ p['wo'] + p['bo']

    def ln(y, g, b):
        mu = y.mean(-1, keepdims=True)
        var = ((y - mu) ** 2).mean(-1, keepdims=True)
        return (y - mu) / jnp.sqrt(var + EPS) * g + b

    x1 = ln(x + attn, p['g1'], p['be1'])
    ff = jnp.maximum(x1 @ p['w1'] + p['b1'], 0.0) @ p['w2'] + p['b2']
    return ln(x1 + ff, p['g2'], p['be2'])


def ref_forward(x, layer_params, norm_params):
    out = x
    for p in layer_params:
        out = ref_layer(out, p)
    mu = out.mean(-1, keepdims=True)
    var = ((out - mu) ** 2).mean(-1, keepdims=True)
    return (out - mu) / jnp.sqrt(var + EPS) * norm_params['g'] + norm_params['b']


# ---------------------------------------------------------------- main
if __name__ == "__main__":
    key = jax.random.PRNGKey(0)
    kx, kn1, kn2, *kls = jax.random.split(key, NUM_LAYERS + 3)

    x = jax.random.normal(kx, (B, S, D), jnp.float32)
    layer_params = [make_layer_params(k) for k in kls]
    norm_params = {'g': 1.0 + 0.02 * jax.random.normal(kn1, (1, D), jnp.float32),
                   'b': 0.02 * jax.random.normal(kn2, (1, D), jnp.float32)}

    packed = pack_params(layer_params, norm_params)

    out = encoder_forward(x, packed)
    jax.block_until_ready(out)

    ref = ref_forward(x, layer_params, norm_params)
    assert out.shape == (B, S, D)
    assert jnp.allclose(out, ref, atol=1e-4, rtol=1e-4), "mismatch vs JAX reference"

    print("KERNEL_OK")
</pallas_src>

<mosaic_0001>
module attributes {stable_mosaic.version = 11 : i64} {
  func.func @encoder_kernel(%arg0: memref<16x32xf32, #tpu.memory_space<vmem>>, %arg1: memref<2x32x96xf32, #tpu.memory_space<vmem>>, %arg2: memref<2x1x96xf32, #tpu.memory_space<vmem>>, %arg3: memref<2x32x32xf32, #tpu.memory_space<vmem>>, %arg4: memref<2x32x64xf32, #tpu.memory_space<vmem>>, %arg5: memref<2x1x64xf32, #tpu.memory_space<vmem>>, %arg6: memref<2x64x32xf32, #tpu.memory_space<vmem>>, %arg7: memref<2x6x32xf32, #tpu.memory_space<vmem>>, %arg8: memref<2x32xf32, #tpu.memory_space<vmem>>, %arg9: memref<16x32xf32, #tpu.memory_space<vmem>>) attributes {dimension_semantics = [], scalar_prefetch = 0 : i64, scratch_operands = 0 : i64, tpu.core_type = #tpu.core_type<tc>} {
    %c0 = arith.constant 0 : index
    %c0_0 = arith.constant 0 : index
    %0 = vector.load %arg0[%c0, %c0_0] : memref<16x32xf32, #tpu.memory_space<vmem>>, vector<16x32xf32>
    %c0_1 = arith.constant 0 : index
    %c0_2 = arith.constant 0 : index
    %c0_3 = arith.constant 0 : index
    %1 = vector.load %arg1[%c0_1, %c0_2, %c0_3] : memref<2x32x96xf32, #tpu.memory_space<vmem>>, vector<1x32x96xf32>
    %2 = vector.shape_cast %1 : vector<1x32x96xf32> to vector<32x96xf32>
    %c0_4 = arith.constant 0 : index
    %c0_5 = arith.constant 0 : index
    %c0_6 = arith.constant 0 : index
    %3 = vector.load %arg2[%c0_4, %c0_5, %c0_6] : memref<2x1x96xf32, #tpu.memory_space<vmem>>, vector<1x1x96xf32>
    %4 = vector.shape_cast %3 : vector<1x1x96xf32> to vector<1x96xf32>
    %c0_7 = arith.constant 0 : index
    %c0_8 = arith.constant 0 : index
    %c0_9 = arith.constant 0 : index
    %5 = vector.load %arg3[%c0_7, %c0_8, %c0_9] : memref<2x32x32xf32, #tpu.memory_space<vmem>>, vector<1x32x32xf32>
    %6 = vector.shape_cast %5 : vector<1x32x32xf32> to vector<32x32xf32>
    %c0_10 = arith.constant 0 : index
    %c0_11 = arith.constant 0 : index
    %c0_12 = arith.constant 0 : index
    %7 = vector.load %arg4[%c0_10, %c0_11, %c0_12] : memref<2x32x64xf32, #tpu.memory_space<vmem>>, vector<1x32x64xf32>
    %8 = vector.shape_cast %7 : vector<1x32x64xf32> to vector<32x64xf32>
    %c0_13 = arith.constant 0 : index
    %c0_14 = arith.constant 0 : index
    %c0_15 = arith.constant 0 : index
    %9 = vector.load %arg5[%c0_13, %c0_14, %c0_15] : memref<2x1x64xf32, #tpu.memory_space<vmem>>, vector<1x1x64xf32>
    %10 = vector.shape_cast %9 : vector<1x1x64xf32> to vector<1x64xf32>
    %c0_16 = arith.constant 0 : index
    %c0_17 = arith.constant 0 : index
    %c0_18 = arith.constant 0 : index
    %11 = vector.load %arg6[%c0_16, %c0_17, %c0_18] : memref<2x64x32xf32, #tpu.memory_space<vmem>>, vector<1x64x32xf32>
    %12 = vector.shape_cast %11 : vector<1x64x32xf32> to vector<64x32xf32>
    %c0_19 = arith.constant 0 : index
    %c0_20 = arith.constant 0 : index
    %c0_21 = arith.constant 0 : index
    %13 = vector.load %arg7[%c0_19, %c0_20, %c0_21] : memref<2x6x32xf32, #tpu.memory_space<vmem>>, vector<1x6x32xf32>
    %14 = vector.shape_cast %13 : vector<1x6x32xf32> to vector<6x32xf32>
    %15 = vector.extract_strided_slice %14 {offsets = [0, 0], sizes = [1, 32], strides = [1, 1]} : vector<6x32xf32> to vector<1x32xf32>
    %16 = vector.extract_strided_slice %14 {offsets = [1, 0], sizes = [1, 32], strides = [1, 1]} : vector<6x32xf32> to vector<1x32xf32>
    %17 = vector.extract_strided_slice %14 {offsets = [2, 0], sizes = [1, 32], strides = [1, 1]} : vector<6x32xf32> to vector<1x32xf32>
    %18 = vector.extract_strided_slice %14 {offsets = [3, 0], sizes = [1, 32], strides = [1, 1]} : vector<6x32xf32> to vector<1x32xf32>
    %19 = vector.extract_strided_slice %14 {offsets = [4, 0], sizes = [1, 32], strides = [1, 1]} : vector<6x32xf32> to vector<1x32xf32>
    %20 = vector.extract_strided_slice %14 {offsets = [5, 0], sizes = [1, 32], strides = [1, 1]} : vector<6x32xf32> to vector<1x32xf32>
    %cst = arith.constant dense<0.000000e+00> : vector<16x96xf32>
    %21 = tpu.matmul %0, %2, %cst {dimension_numbers = #tpu.dot_dimension_numbers<[1], [0], [0], [1], [0, 0, 1, 1], [], []>} : vector<16x32xf32>, vector<32x96xf32>, vector<16x96xf32> -> vector<16x96xf32>
    %22 = vector.broadcast %4 : vector<1x96xf32> to vector<16x96xf32>
    %23 = arith.addf %21, %22 : vector<16x96xf32>
    %24 = vector.shape_cast %23 : vector<16x96xf32> to vector<2x8x96xf32>
    %cst_22 = arith.constant 0.000000e+00 : f32
    %25 = vector.broadcast %cst_22 : f32 to vector<16x32xf32>
    %26 = vector.extract_strided_slice %24 {offsets = [0, 0, 0], sizes = [2, 8, 8], strides = [1, 1, 1]} : vector<2x8x96xf32> to vector<2x8x8xf32>
    %27 = vector.extract_strided_slice %24 {offsets = [0, 0, 32], sizes = [2, 8, 8], strides = [1, 1, 1]} : vector<2x8x96xf32> to vector<2x8x8xf32>
    %28 = vector.extract_strided_slice %24 {offsets = [0, 0, 64], sizes = [2, 8, 8], strides = [1, 1, 1]} : vector<2x8x96xf32> to vector<2x8x8xf32>
    "tpu.trace_start"() <{level = 10 : i32, message = "bqd,bkd->bqk"}> : () -> ()
    %cst_23 = arith.constant dense<0.000000e+00> : vector<2x8x8xf32>
    %29 = tpu.matmul %26, %27, %cst_23 {dimension_numbers = #tpu.dot_dimension_numbers<[2], [2], [1], [1], [0, 0, 0, 1, 1, 1], [0], [0]>} : vector<2x8x8xf32>, vector<2x8x8xf32>, vector<2x8x8xf32> -> vector<2x8x8xf32>
    "tpu.trace_stop"() : () -> ()
    %cst_24 = arith.constant 0.353553385 : f32
    %30 = vector.broadcast %cst_24 : f32 to vector<2x8x8xf32>
    %31 = arith.mulf %29, %30 : vector<2x8x8xf32>
    %cst_25 = arith.constant dense<0xFF800000> : vector<2x8xf32>
    %32 = vector.multi_reduction <maximumf>, %31, %cst_25 [2] : vector<2x8x8xf32> to vector<2x8xf32>
    %33 = vector.shape_cast %32 : vector<2x8xf32> to vector<2x8x1xf32>
    %34 = vector.broadcast %33 : vector<2x8x1xf32> to vector<2x8x8xf32>
    %35 = arith.subf %31, %34 : vector<2x8x8xf32>
    %36 = math.exp %35 : vector<2x8x8xf32>
    %cst_26 = arith.constant dense<0.000000e+00> : vector<2x8xf32>
    %37 = vector.multi_reduction <add>, %36, %cst_26 [2] : vector<2x8x8xf32> to vector<2x8xf32>
    %38 = vector.shape_cast %37 : vector<2x8xf32> to vector<2x8x1xf32>
    %39 = tpu.reciprocal %38 : vector<2x8x1xf32> -> vector<2x8x1xf32>
    %40 = vector.broadcast %39 : vector<2x8x1xf32> to vector<2x8x8xf32>
    %41 = arith.mulf %36, %40 : vector<2x8x8xf32>
    "tpu.trace_start"() <{level = 10 : i32, message = "bqk,bkd->bqd"}> : () -> ()
    %cst_27 = arith.constant dense<0.000000e+00> : vector<2x8x8xf32>
    %42 = tpu.matmul %41, %28, %cst_27 {dimension_numbers = #tpu.dot_dimension_numbers<[2], [1], [1], [2], [0, 0, 0, 1, 1, 2], [0], [0]>} : vector<2x8x8xf32>, vector<2x8x8xf32>, vector<2x8x8xf32> -> vector<2x8x8xf32>
    "tpu.trace_stop"() : () -> ()
    %43 = vector.shape_cast %42 : vector<2x8x8xf32> to vector<16x8xf32>
    %44 = vector.extract_strided_slice %6 {offsets = [0, 0], sizes = [8, 32], strides = [1, 1]} : vector<32x32xf32> to vector<8x32xf32>
    %cst_28 = arith.constant dense<0.000000e+00> : vector<16x32xf32>
    %45 = tpu.matmul %43, %44, %cst_28 {dimension_numbers = #tpu.dot_dimension_numbers<[1], [0], [0], [1], [0, 0, 1, 1], [], []>} : vector<16x8xf32>, vector<8x32xf32>, vector<16x32xf32> -> vector<16x32xf32>
    %46 = arith.addf %25, %45 : vector<16x32xf32>
    %47 = vector.extract_strided_slice %24 {offsets = [0, 0, 8], sizes = [2, 8, 8], strides = [1, 1, 1]} : vector<2x8x96xf32> to vector<2x8x8xf32>
    %48 = vector.extract_strided_slice %24 {offsets = [0, 0, 40], sizes = [2, 8, 8], strides = [1, 1, 1]} : vector<2x8x96xf32> to vector<2x8x8xf32>
    %49 = vector.extract_strided_slice %24 {offsets = [0, 0, 72], sizes = [2, 8, 8], strides = [1, 1, 1]} : vector<2x8x96xf32> to vector<2x8x8xf32>
    "tpu.trace_start"() <{level = 10 : i32, message = "bqd,bkd->bqk"}> : () -> ()
    %cst_29 = arith.constant dense<0.000000e+00> : vector<2x8x8xf32>
    %50 = tpu.matmul %47, %48, %cst_29 {dimension_numbers = #tpu.dot_dimension_numbers<[2], [2], [1], [1], [0, 0, 0, 1, 1, 1], [0], [0]>} : vector<2x8x8xf32>, vector<2x8x8xf32>, vector<2x8x8xf32> -> vector<2x8x8xf32>
    "tpu.trace_stop"() : () -> ()
    %cst_30 = arith.constant 0.353553385 : f32
    %51 = vector.broadcast %cst_30 : f32 to vector<2x8x8xf32>
    %52 = arith.mulf %50, %51 : vector<2x8x8xf32>
    %cst_31 = arith.constant dense<0xFF800000> : vector<2x8xf32>
    %53 = vector.multi_reduction <maximumf>, %52, %cst_31 [2] : vector<2x8x8xf32> to vector<2x8xf32>
    %54 = vector.shape_cast %53 : vector<2x8xf32> to vector<2x8x1xf32>
    %55 = vector.broadcast %54 : vector<2x8x1xf32> to vector<2x8x8xf32>
    %56 = arith.subf %52, %55 : vector<2x8x8xf32>
    %57 = math.exp %56 : vector<2x8x8xf32>
    %cst_32 = arith.constant dense<0.000000e+00> : vector<2x8xf32>
    %58 = vector.multi_reduction <add>, %57, %cst_32 [2] : vector<2x8x8xf32> to vector<2x8xf32>
    %59 = vector.shape_cast %58 : vector<2x8xf32> to vector<2x8x1xf32>
    %60 = tpu.reciprocal %59 : vector<2x8x1xf32> -> vector<2x8x1xf32>
    %61 = vector.broadcast %60 : vector<2x8x1xf32> to vector<2x8x8xf32>
    %62 = arith.mulf %57, %61 : vector<2x8x8xf32>
    "tpu.trace_start"() <{level = 10 : i32, message = "bqk,bkd->bqd"}> : () -> ()
    %cst_33 = arith.constant dense<0.000000e+00> : vector<2x8x8xf32>
    %63 = tpu.matmul %62, %49, %cst_33 {dimension_numbers = #tpu.dot_dimension_numbers<[2], [1], [1], [2], [0, 0, 0, 1, 1, 2], [0], [0]>} : vector<2x8x8xf32>, vector<2x8x8xf32>, vector<2x8x8xf32> -> vector<2x8x8xf32>
    "tpu.trace_stop"() : () -> ()
    %64 = vector.shape_cast %63 : vector<2x8x8xf32> to vector<16x8xf32>
    %65 = vector.extract_strided_slice %6 {offsets = [8, 0], sizes = [8, 32], strides = [1, 1]} : vector<32x32xf32> to vector<8x32xf32>
    %cst_34 = arith.constant dense<0.000000e+00> : vector<16x32xf32>
    %66 = tpu.matmul %64, %65, %cst_34 {dimension_numbers = #tpu.dot_dimension_numbers<[1], [0], [0], [1], [0, 0, 1, 1], [], []>} : vector<16x8xf32>, vector<8x32xf32>, vector<16x32xf32> -> vector<16x32xf32>
    %67 = arith.addf %46, %66 : vector<16x32xf32>
    %68 = vector.extract_strided_slice %24 {offsets = [0, 0, 16], sizes = [2, 8, 8], strides = [1, 1, 1]} : vector<2x8x96xf32> to vector<2x8x8xf32>
    %69 = vector.extract_strided_slice %24 {offsets = [0, 0, 48], sizes = [2, 8, 8], strides = [1, 1, 1]} : vector<2x8x96xf32> to vector<2x8x8xf32>
    %70 = vector.extract_strided_slice %24 {offsets = [0, 0, 80], sizes = [2, 8, 8], strides = [1, 1, 1]} : vector<2x8x96xf32> to vector<2x8x8xf32>
    "tpu.trace_start"() <{level = 10 : i32, message = "bqd,bkd->bqk"}> : () -> ()
    %cst_35 = arith.constant dense<0.000000e+00> : vector<2x8x8xf32>
    %71 = tpu.matmul %68, %69, %cst_35 {dimension_numbers = #tpu.dot_dimension_numbers<[2], [2], [1], [1], [0, 0, 0, 1, 1, 1], [0], [0]>} : vector<2x8x8xf32>, vector<2x8x8xf32>, vector<2x8x8xf32> -> vector<2x8x8xf32>
    "tpu.trace_stop"() : () -> ()
    %cst_36 = arith.constant 0.353553385 : f32
    %72 = vector.broadcast %cst_36 : f32 to vector<2x8x8xf32>
    %73 = arith.mulf %71, %72 : vector<2x8x8xf32>
    %cst_37 = arith.constant dense<0xFF800000> : vector<2x8xf32>
    %74 = vector.multi_reduction <maximumf>, %73, %cst_37 [2] : vector<2x8x8xf32> to vector<2x8xf32>
    %75 = vector.shape_cast %74 : vector<2x8xf32> to vector<2x8x1xf32>
    %76 = vector.broadcast %75 : vector<2x8x1xf32> to vector<2x8x8xf32>
    %77 = arith.subf %73, %76 : vector<2x8x8xf32>
    %78 = math.exp %77 : vector<2x8x8xf32>
    %cst_38 = arith.constant dense<0.000000e+00> : vector<2x8xf32>
    %79 = vector.multi_reduction <add>, %78, %cst_38 [2] : vector<2x8x8xf32> to vector<2x8xf32>
    %80 = vector.shape_cast %79 : vector<2x8xf32> to vector<2x8x1xf32>
    %81 = tpu.reciprocal %80 : vector<2x8x1xf32> -> vector<2x8x1xf32>
    %82 = vector.broadcast %81 : vector<2x8x1xf32> to vector<2x8x8xf32>
    %83 = arith.mulf %78, %82 : vector<2x8x8xf32>
    "tpu.trace_start"() <{level = 10 : i32, message = "bqk,bkd->bqd"}> : () -> ()
    %cst_39 = arith.constant dense<0.000000e+00> : vector<2x8x8xf32>
    %84 = tpu.matmul %83, %70, %cst_39 {dimension_numbers = #tpu.dot_dimension_numbers<[2], [1], [1], [2], [0, 0, 0, 1, 1, 2], [0], [0]>} : vector<2x8x8xf32>, vector<2x8x8xf32>, vector<2x8x8xf32> -> vector<2x8x8xf32>
    "tpu.trace_stop"() : () -> ()
    %85 = vector.shape_cast %84 : vector<2x8x8xf32> to vector<16x8xf32>
    %86 = vector.extract_strided_slice %6 {offsets = [16, 0], sizes = [8, 32], strides = [1, 1]} : vector<32x32xf32> to vector<8x32xf32>
    %cst_40 = arith.constant dense<0.000000e+00> : vector<16x32xf32>
    %87 = tpu.matmul %85, %86, %cst_40 {dimension_numbers = #tpu.dot_dimension_numbers<[1], [0], [0], [1], [0, 0, 1, 1], [], []>} : vector<16x8xf32>, vector<8x32xf32>, vector<16x32xf32> -> vector<16x32xf32>
    %88 = arith.addf %67, %87 : vector<16x32xf32>
    %89 = vector.extract_strided_slice %24 {offsets = [0, 0, 24], sizes = [2, 8, 8], strides = [1, 1, 1]} : vector<2x8x96xf32> to vector<2x8x8xf32>
    %90 = vector.extract_strided_slice %24 {offsets = [0, 0, 56], sizes = [2, 8, 8], strides = [1, 1, 1]} : vector<2x8x96xf32> to vector<2x8x8xf32>
    %91 = vector.extract_strided_slice %24 {offsets = [0, 0, 88], sizes = [2, 8, 8], strides = [1, 1, 1]} : vector<2x8x96xf32> to vector<2x8x8xf32>
    "tpu.trace_start"() <{level = 10 : i32, message = "bqd,bkd->bqk"}> : () -> ()
    %cst_41 = arith.constant dense<0.000000e+00> : vector<2x8x8xf32>
    %92 = tpu.matmul %89, %90, %cst_41 {dimension_numbers = #tpu.dot_dimension_numbers<[2], [2], [1], [1], [0, 0, 0, 1, 1, 1], [0], [0]>} : vector<2x8x8xf32>, vector<2x8x8xf32>, vector<2x8x8xf32> -> vector<2x8x8xf32>
    "tpu.trace_stop"() : () -> ()
    %cst_42 = arith.constant 0.353553385 : f32
    %93 = vector.broadcast %cst_42 : f32 to vector<2x8x8xf32>
    %94 = arith.mulf %92, %93 : vector<2x8x8xf32>
    %cst_43 = arith.constant dense<0xFF800000> : vector<2x8xf32>
    %95 = vector.multi_reduction <maximumf>, %94, %cst_43 [2] : vector<2x8x8xf32> to vector<2x8xf32>
    %96 = vector.shape_cast %95 : vector<2x8xf32> to vector<2x8x1xf32>
    %97 = vector.broadcast %96 : vector<2x8x1xf32> to vector<2x8x8xf32>
    %98 = arith.subf %94, %97 : vector<2x8x8xf32>
    %99 = math.exp %98 : vector<2x8x8xf32>
    %cst_44 = arith.constant dense<0.000000e+00> : vector<2x8xf32>
    %100 = vector.multi_reduction <add>, %99, %cst_44 [2] : vector<2x8x8xf32> to vector<2x8xf32>
    %101 = vector.shape_cast %100 : vector<2x8xf32> to vector<2x8x1xf32>
    %102 = tpu.reciprocal %101 : vector<2x8x1xf32> -> vector<2x8x1xf32>
    %103 = vector.broadcast %102 : vector<2x8x1xf32> to vector<2x8x8xf32>
    %104 = arith.mulf %99, %103 : vector<2x8x8xf32>
    "tpu.trace_start"() <{level = 10 : i32, message = "bqk,bkd->bqd"}> : () -> ()
    %cst_45 = arith.constant dense<0.000000e+00> : vector<2x8x8xf32>
    %105 = tpu.matmul %104, %91, %cst_45 {dimension_numbers = #tpu.dot_dimension_numbers<[2], [1], [1], [2], [0, 0, 0, 1, 1, 2], [0], [0]>} : vector<2x8x8xf32>, vector<2x8x8xf32>, vector<2x8x8xf32> -> vector<2x8x8xf32>
    "tpu.trace_stop"() : () -> ()
    %106 = vector.shape_cast %105 : vector<2x8x8xf32> to vector<16x8xf32>
    %107 = vector.extract_strided_slice %6 {offsets = [24, 0], sizes = [8, 32], strides = [1, 1]} : vector<32x32xf32> to vector<8x32xf32>
    %cst_46 = arith.constant dense<0.000000e+00> : vector<16x32xf32>
    %108 = tpu.matmul %106, %107, %cst_46 {dimension_numbers = #tpu.dot_dimension_numbers<[1], [0], [0], [1], [0, 0, 1, 1], [], []>} : vector<16x8xf32>, vector<8x32xf32>, vector<16x32xf32> -> vector<16x32xf32>
    %109 = arith.addf %88, %108 : vector<16x32xf32>
    %110 = vector.broadcast %15 : vector<1x32xf32> to vector<16x32xf32>
    %111 = arith.addf %109, %110 : vector<16x32xf32>
    %112 = arith.addf %0, %111 : vector<16x32xf32>
    %cst_47 = arith.constant dense<0.000000e+00> : vector<16xf32>
    %113 = vector.multi_reduction <add>, %112, %cst_47 [1] : vector<16x32xf32> to vector<16xf32>
    %114 = vector.shape_cast %113 : vector<16xf32> to vector<16x1xf32>
    %cst_48 = arith.constant 3.200000e+01 : f32
    %115 = vector.broadcast %cst_48 : f32 to vector<16x1xf32>
    %116 = arith.divf %114, %115 : vector<16x1xf32>
    %117 = vector.broadcast %116 : vector<16x1xf32> to vector<16x32xf32>
    %118 = arith.subf %112, %117 : vector<16x32xf32>
    %119 = arith.mulf %118, %118 : vector<16x32xf32>
    %cst_49 = arith.constant dense<0.000000e+00> : vector<16xf32>
    %120 = vector.multi_reduction <add>, %119, %cst_49 [1] : vector<16x32xf32> to vector<16xf32>
    %121 = vector.shape_cast %120 : vector<16xf32> to vector<16x1xf32>
    %cst_50 = arith.constant 3.200000e+01 : f32
    %122 = vector.broadcast %cst_50 : f32 to vector<16x1xf32>
    %123 = arith.divf %121, %122 : vector<16x1xf32>
    %124 = vector.broadcast %116 : vector<16x1xf32> to vector<16x32xf32>
    %125 = arith.subf %112, %124 : vector<16x32xf32>
    %cst_51 = arith.constant 9.99999974E-6 : f32
    %126 = vector.broadcast %cst_51 : f32 to vector<16x1xf32>
    %127 = arith.addf %123, %126 : vector<16x1xf32>
    %128 = math.rsqrt %127 : vector<16x1xf32>
    %129 = vector.broadcast %128 : vector<16x1xf32> to vector<16x32xf32>
    %130 = arith.mulf %125, %129 : vector<16x32xf32>
    %131 = vector.broadcast %17 : vector<1x32xf32> to vector<16x32xf32>
    %132 = arith.mulf %130, %131 : vector<16x32xf32>
    %133 = vector.broadcast %18 : vector<1x32xf32> to vector<16x32xf32>
    %134 = arith.addf %132, %133 : vector<16x32xf32>
    %cst_52 = arith.constant dense<0.000000e+00> : vector<16x64xf32>
    %135 = tpu.matmul %134, %8, %cst_52 {dimension_numbers = #tpu.dot_dimension_numbers<[1], [0], [0], [1], [0, 0, 1, 1], [], []>} : vector<16x32xf32>, vector<32x64xf32>, vector<16x64xf32> -> vector<16x64xf32>
    %136 = vector.broadcast %10 : vector<1x64xf32> to vector<16x64xf32>
    %137 = arith.addf %135, %136 : vector<16x64xf32>
    %cst_53 = arith.constant 0.000000e+00 : f32
    %138 = vector.broadcast %cst_53 : f32 to vector<16x64xf32>
    %139 = arith.maximumf %137, %138 : vector<16x64xf32>
    %cst_54 = arith.constant dense<0.000000e+00> : vector<16x32xf32>
    %140 = tpu.matmul %139, %12, %cst_54 {dimension_numbers = #tpu.dot_dimension_numbers<[1], [0], [0], [1], [0, 0, 1, 1], [], []>} : vector<16x64xf32>, vector<64x32xf32>, vector<16x32xf32> -> vector<16x32xf32>
    %141 = vector.broadcast %16 : vector<1x32xf32> to vector<16x32xf32>
    %142 = arith.addf %140, %141 : vector<16x32xf32>
    %143 = arith.addf %134, %142 : vector<16x32xf32>
    %cst_55 = arith.constant dense<0.000000e+00> : vector<16xf32>
    %144 = vector.multi_reduction <add>, %143, %cst_55 [1] : vector<16x32xf32> to vector<16xf32>
    %145 = vector.shape_cast %144 : vector<16xf32> to vector<16x1xf32>
    %cst_56 = arith.constant 3.200000e+01 : f32
    %146 = vector.broadcast %cst_56 : f32 to vector<16x1xf32>
    %147 = arith.divf %145, %146 : vector<16x1xf32>
    %148 = vector.broadcast %147 : vector<16x1xf32> to vector<16x32xf32>
    %149 = arith.subf %143, %148 : vector<16x32xf32>
    %150 = arith.mulf %149, %149 : vector<16x32xf32>
    %cst_57 = arith.constant dense<0.000000e+00> : vector<16xf32>
    %151 = vector.multi_reduction <add>, %150, %cst_57 [1] : vector<16x32xf32> to vector<16xf32>
    %152 = vector.shape_cast %151 : vector<16xf32> to vector<16x1xf32>
    %cst_58 = arith.constant 3.200000e+01 : f32
    %153 = vector.broadcast %cst_58 : f32 to vector<16x1xf32>
    %154 = arith.divf %152, %153 : vector<16x1xf32>
    %155 = vector.broadcast %147 : vector<16x1xf32> to vector<16x32xf32>
    %156 = arith.subf %143, %155 : vector<16x32xf32>
    %cst_59 = arith.constant 9.99999974E-6 : f32
    %157 = vector.broadcast %cst_59 : f32 to vector<16x1xf32>
    %158 = arith.addf %154, %157 : vector<16x1xf32>
    %159 = math.rsqrt %158 : vector<16x1xf32>
    %160 = vector.broadcast %159 : vector<16x1xf32> to vector<16x32xf32>
    %161 = arith.mulf %156, %160 : vector<16x32xf32>
    %162 = vector.broadcast %19 : vector<1x32xf32> to vector<16x32xf32>
    %163 = arith.mulf %161, %162 : vector<16x32xf32>
    %164 = vector.broadcast %20 : vector<1x32xf32> to vector<16x32xf32>
    %165 = arith.addf %163, %164 : vector<16x32xf32>
    %c1 = arith.constant 1 : index
    %c0_60 = arith.constant 0 : index
    %c0_61 = arith.constant 0 : index
    %166 = vector.load %arg1[%c1, %c0_60, %c0_61] : memref<2x32x96xf32, #tpu.memory_space<vmem>>, vector<1x32x96xf32>
    %167 = vector.shape_cast %166 : vector<1x32x96xf32> to vector<32x96xf32>
    %c1_62 = arith.constant 1 : index
    %c0_63 = arith.constant 0 : index
    %c0_64 = arith.constant 0 : index
    %168 = vector.load %arg2[%c1_62, %c0_63, %c0_64] : memref<2x1x96xf32, #tpu.memory_space<vmem>>, vector<1x1x96xf32>
    %169 = vector.shape_cast %168 : vector<1x1x96xf32> to vector<1x96xf32>
    %c1_65 = arith.constant 1 : index
    %c0_66 = arith.constant 0 : index
    %c0_67 = arith.constant 0 : index
    %170 = vector.load %arg3[%c1_65, %c0_66, %c0_67] : memref<2x32x32xf32, #tpu.memory_space<vmem>>, vector<1x32x32xf32>
    %171 = vector.shape_cast %170 : vector<1x32x32xf32> to vector<32x32xf32>
    %c1_68 = arith.constant 1 : index
    %c0_69 = arith.constant 0 : index
    %c0_70 = arith.constant 0 : index
    %172 = vector.load %arg4[%c1_68, %c0_69, %c0_70] : memref<2x32x64xf32, #tpu.memory_space<vmem>>, vector<1x32x64xf32>
    %173 = vector.shape_cast %172 : vector<1x32x64xf32> to vector<32x64xf32>
    %c1_71 = arith.constant 1 : index
    %c0_72 = arith.constant 0 : index
    %c0_73 = arith.constant 0 : index
    %174 = vector.load %arg5[%c1_71, %c0_72, %c0_73] : memref<2x1x64xf32, #tpu.memory_space<vmem>>, vector<1x1x64xf32>
    %175 = vector.shape_cast %174 : vector<1x1x64xf32> to vector<1x64xf32>
    %c1_74 = arith.constant 1 : index
    %c0_75 = arith.constant 0 : index
    %c0_76 = arith.constant 0 : index
    %176 = vector.load %arg6[%c1_74, %c0_75, %c0_76] : memref<2x64x32xf32, #tpu.memory_space<vmem>>, vector<1x64x32xf32>
    %177 = vector.shape_cast %176 : vector<1x64x32xf32> to vector<64x32xf32>
    %c1_77 = arith.constant 1 : index
    %c0_78 = arith.constant 0 : index
    %c0_79 = arith.constant 0 : index
    %178 = vector.load %arg7[%c1_77, %c0_78, %c0_79] : memref<2x6x32xf32, #tpu.memory_space<vmem>>, vector<1x6x32xf32>
    %179 = vector.shape_cast %178 : vector<1x6x32xf32> to vector<6x32xf32>
    %180 = vector.extract_strided_slice %179 {offsets = [0, 0], sizes = [1, 32], strides = [1, 1]} : vector<6x32xf32> to vector<1x32xf32>
    %181 = vector.extract_strided_slice %179 {offsets = [1, 0], sizes = [1, 32], strides = [1, 1]} : vector<6x32xf32> to vector<1x32xf32>
    %182 = vector.extract_strided_slice %179 {offsets = [2, 0], sizes = [1, 32], strides = [1, 1]} : vector<6x32xf32> to vector<1x32xf32>
    %183 = vector.extract_strided_slice %179 {offsets = [3, 0], sizes = [1, 32], strides = [1, 1]} : vector<6x32xf32> to vector<1x32xf32>
    %184 = vector.extract_strided_slice %179 {offsets = [4, 0], sizes = [1, 32], strides = [1, 1]} : vector<6x32xf32> to vector<1x32xf32>
    %185 = vector.extract_strided_slice %179 {offsets = [5, 0], sizes = [1, 32], strides = [1, 1]} : vector<6x32xf32> to vector<1x32xf32>
    %cst_80 = arith.constant dense<0.000000e+00> : vector<16x96xf32>
    %186 = tpu.matmul %165, %167, %cst_80 {dimension_numbers = #tpu.dot_dimension_numbers<[1], [0], [0], [1], [0, 0, 1, 1], [], []>} : vector<16x32xf32>, vector<32x96xf32>, vector<16x96xf32> -> vector<16x96xf32>
    %187 = vector.broadcast %169 : vector<1x96xf32> to vector<16x96xf32>
    %188 = arith.addf %186, %187 : vector<16x96xf32>
    %189 = vector.shape_cast %188 : vector<16x96xf32> to vector<2x8x96xf32>
    %cst_81 = arith.constant 0.000000e+00 : f32
    %190 = vector.broadcast %cst_81 : f32 to vector<16x32xf32>
    %191 = vector.extract_strided_slice %189 {offsets = [0, 0, 0], sizes = [2, 8, 8], strides = [1, 1, 1]} : vector<2x8x96xf32> to vector<2x8x8xf32>
    %192 = vector.extract_strided_slice %189 {offsets = [0, 0, 32], sizes = [2, 8, 8], strides = [1, 1, 1]} : vector<2x8x96xf32> to vector<2x8x8xf32>
    %193 = vector.extract_strided_slice %189 {offsets = [0, 0, 64], sizes = [2, 8, 8], strides = [1, 1, 1]} : vector<2x8x96xf32> to vector<2x8x8xf32>
    "tpu.trace_start"() <{level = 10 : i32, message = "bqd,bkd->bqk"}> : () -> ()
    %cst_82 = arith.constant dense<0.000000e+00> : vector<2x8x8xf32>
    %194 = tpu.matmul %191, %192, %cst_82 {dimension_numbers = #tpu.dot_dimension_numbers<[2], [2], [1], [1], [0, 0, 0, 1, 1, 1], [0], [0]>} : vector<2x8x8xf32>, vector<2x8x8xf32>, vector<2x8x8xf32> -> vector<2x8x8xf32>
    "tpu.trace_stop"() : () -> ()
    %cst_83 = arith.constant 0.353553385 : f32
    %195 = vector.broadcast %cst_83 : f32 to vector<2x8x8xf32>
    %196 = arith.mulf %194, %195 : vector<2x8x8xf32>
    %cst_84 = arith.constant dense<0xFF800000> : vector<2x8xf32>
    %197 = vector.multi_reduction <maximumf>, %196, %cst_84 [2] : vector<2x8x8xf32> to vector<2x8xf32>
    %198 = vector.shape_cast %197 : vector<2x8xf32> to vector<2x8x1xf32>
    %199 = vector.broadcast %198 : vector<2x8x1xf32> to vector<2x8x8xf32>
    %200 = arith.subf %196, %199 : vector<2x8x8xf32>
    %201 = math.exp %200 : vector<2x8x8xf32>
    %cst_85 = arith.constant dense<0.000000e+00> : vector<2x8xf32>
    %202 = vector.multi_reduction <add>, %201, %cst_85 [2] : vector<2x8x8xf32> to vector<2x8xf32>
    %203 = vector.shape_cast %202 : vector<2x8xf32> to vector<2x8x1xf32>
    %204 = tpu.reciprocal %203 : vector<2x8x1xf32> -> vector<2x8x1xf32>
    %205 = vector.broadcast %204 : vector<2x8x1xf32> to vector<2x8x8xf32>
    %206 = arith.mulf %201, %205 : vector<2x8x8xf32>
    "tpu.trace_start"() <{level = 10 : i32, message = "bqk,bkd->bqd"}> : () -> ()
    %cst_86 = arith.constant dense<0.000000e+00> : vector<2x8x8xf32>
    %207 = tpu.matmul %206, %193, %cst_86 {dimension_numbers = #tpu.dot_dimension_numbers<[2], [1], [1], [2], [0, 0, 0, 1, 1, 2], [0], [0]>} : vector<2x8x8xf32>, vector<2x8x8xf32>, vector<2x8x8xf32> -> vector<2x8x8xf32>
    "tpu.trace_stop"() : () -> ()
    %208 = vector.shape_cast %207 : vector<2x8x8xf32> to vector<16x8xf32>
    %209 = vector.extract_strided_slice %171 {offsets = [0, 0], sizes = [8, 32], strides = [1, 1]} : vector<32x32xf32> to vector<8x32xf32>
    %cst_87 = arith.constant dense<0.000000e+00> : vector<16x32xf32>
    %210 = tpu.matmul %208, %209, %cst_87 {dimension_numbers = #tpu.dot_dimension_numbers<[1], [0], [0], [1], [0, 0, 1, 1], [], []>} : vector<16x8xf32>, vector<8x32xf32>, vector<16x32xf32> -> vector<16x32xf32>
    %211 = arith.addf %190, %210 : vector<16x32xf32>
    %212 = vector.extract_strided_slice %189 {offsets = [0, 0, 8], sizes = [2, 8, 8], strides = [1, 1, 1]} : vector<2x8x96xf32> to vector<2x8x8xf32>
    %213 = vector.extract_strided_slice %189 {offsets = [0, 0, 40], sizes = [2, 8, 8], strides = [1, 1, 1]} : vector<2x8x96xf32> to vector<2x8x8xf32>
    %214 = vector.extract_strided_slice %189 {offsets = [0, 0, 72], sizes = [2, 8, 8], strides = [1, 1, 1]} : vector<2x8x96xf32> to vector<2x8x8xf32>
    "tpu.trace_start"() <{level = 10 : i32, message = "bqd,bkd->bqk"}> : () -> ()
    %cst_88 = arith.constant dense<0.000000e+00> : vector<2x8x8xf32>
    %215 = tpu.matmul %212, %213, %cst_88 {dimension_numbers = #tpu.dot_dimension_numbers<[2], [2], [1], [1], [0, 0, 0, 1, 1, 1], [0], [0]>} : vector<2x8x8xf32>, vector<2x8x8xf32>, vector<2x8x8xf32> -> vector<2x8x8xf32>
    "tpu.trace_stop"() : () -> ()
    %cst_89 = arith.constant 0.353553385 : f32
    %216 = vector.broadcast %cst_89 : f32 to vector<2x8x8xf32>
    %217 = arith.mulf %215, %216 : vector<2x8x8xf32>
    %cst_90 = arith.constant dense<0xFF800000> : vector<2x8xf32>
    %218 = vector.multi_reduction <maximumf>, %217, %cst_90 [2] : vector<2x8x8xf32> to vector<2x8xf32>
    %219 = vector.shape_cast %218 : vector<2x8xf32> to vector<2x8x1xf32>
    %220 = vector.broadcast %219 : vector<2x8x1xf32> to vector<2x8x8xf32>
    %221 = arith.subf %217, %220 : vector<2x8x8xf32>
    %222 = math.exp %221 : vector<2x8x8xf32>
    %cst_91 = arith.constant dense<0.000000e+00> : vector<2x8xf32>
    %223 = vector.multi_reduction <add>, %222, %cst_91 [2] : vector<2x8x8xf32> to vector<2x8xf32>
    %224 = vector.shape_cast %223 : vector<2x8xf32> to vector<2x8x1xf32>
    %225 = tpu.reciprocal %224 : vector<2x8x1xf32> -> vector<2x8x1xf32>
    %226 = vector.broadcast %225 : vector<2x8x1xf32> to vector<2x8x8xf32>
    %227 = arith.mulf %222, %226 : vector<2x8x8xf32>
    "tpu.trace_start"() <{level = 10 : i32, message = "bqk,bkd->bqd"}> : () -> ()
    %cst_92 = arith.constant dense<0.000000e+00> : vector<2x8x8xf32>
    %228 = tpu.matmul %227, %214, %cst_92 {dimension_numbers = #tpu.dot_dimension_numbers<[2], [1], [1], [2], [0, 0, 0, 1, 1, 2], [0], [0]>} : vector<2x8x8xf32>, vector<2x8x8xf32>, vector<2x8x8xf32> -> vector<2x8x8xf32>
    "tpu.trace_stop"() : () -> ()
    %229 = vector.shape_cast %228 : vector<2x8x8xf32> to vector<16x8xf32>
    %230 = vector.extract_strided_slice %171 {offsets = [8, 0], sizes = [8, 32], strides = [1, 1]} : vector<32x32xf32> to vector<8x32xf32>
    %cst_93 = arith.constant dense<0.000000e+00> : vector<16x32xf32>
    %231 = tpu.matmul %229, %230, %cst_93 {dimension_numbers = #tpu.dot_dimension_numbers<[1], [0], [0], [1], [0, 0, 1, 1], [], []>} : vector<16x8xf32>, vector<8x32xf32>, vector<16x32xf32> -> vector<16x32xf32>
    %232 = arith.addf %211, %231 : vector<16x32xf32>
    %233 = vector.extract_strided_slice %189 {offsets = [0, 0, 16], sizes = [2, 8, 8], strides = [1, 1, 1]} : vector<2x8x96xf32> to vector<2x8x8xf32>
    %234 = vector.extract_strided_slice %189 {offsets = [0, 0, 48], sizes = [2, 8, 8], strides = [1, 1, 1]} : vector<2x8x96xf32> to vector<2x8x8xf32>
    %235 = vector.extract_strided_slice %189 {offsets = [0, 0, 80], sizes = [2, 8, 8], strides = [1, 1, 1]} : vector<2x8x96xf32> to vector<2x8x8xf32>
    "tpu.trace_start"() <{level = 10 : i32, message = "bqd,bkd->bqk"}> : () -> ()
    %cst_94 = arith.constant dense<0.000000e+00> : vector<2x8x8xf32>
    %236 = tpu.matmul %233, %234, %cst_94 {dimension_numbers = #tpu.dot_dimension_numbers<[2], [2], [1], [1], [0, 0, 0, 1, 1, 1], [0], [0]>} : vector<2x8x8xf32>, vector<2x8x8xf32>, vector<2x8x8xf32> -> vector<2x8x8xf32>
    "tpu.trace_stop"() : () -> ()
    %cst_95 = arith.constant 0.353553385 : f32
    %237 = vector.broadcast %cst_95 : f32 to vector<2x8x8xf32>
    %238 = arith.mulf %236, %237 : vector<2x8x8xf32>
    %cst_96 = arith.constant dense<0xFF800000> : vector<2x8xf32>
    %239 = vector.multi_reduction <maximumf>, %238, %cst_96 [2] : vector<2x8x8xf32> to vector<2x8xf32>
    %240 = vector.shape_cast %239 : vector<2x8xf32> to vector<2x8x1xf32>
    %241 = vector.broadcast %240 : vector<2x8x1xf32> to vector<2x8x8xf32>
    %242 = arith.subf %238, %241 : vector<2x8x8xf32>
    %243 = math.exp %242 : vector<2x8x8xf32>
    %cst_97 = arith.constant dense<0.000000e+00> : vector<2x8xf32>
    %244 = vector.multi_reduction <add>, %243, %cst_97 [2] : vector<2x8x8xf32> to vector<2x8xf32>
    %245 = vector.shape_cast %244 : vector<2x8xf32> to vector<2x8x1xf32>
    %246 = tpu.reciprocal %245 : vector<2x8x1xf32> -> vector<2x8x1xf32>
    %247 = vector.broadcast %246 : vector<2x8x1xf32> to vector<2x8x8xf32>
    %248 = arith.mulf %243, %247 : vector<2x8x8xf32>
    "tpu.trace_start"() <{level = 10 : i32, message = "bqk,bkd->bqd"}> : () -> ()
    %cst_98 = arith.constant dense<0.000000e+00> : vector<2x8x8xf32>
    %249 = tpu.matmul %248, %235, %cst_98 {dimension_numbers = #tpu.dot_dimension_numbers<[2], [1], [1], [2], [0, 0, 0, 1, 1, 2], [0], [0]>} : vector<2x8x8xf32>, vector<2x8x8xf32>, vector<2x8x8xf32> -> vector<2x8x8xf32>
    "tpu.trace_stop"() : () -> ()
    %250 = vector.shape_cast %249 : vector<2x8x8xf32> to vector<16x8xf32>
    %251 = vector.extract_strided_slice %171 {offsets = [16, 0], sizes = [8, 32], strides = [1, 1]} : vector<32x32xf32> to vector<8x32xf32>
    %cst_99 = arith.constant dense<0.000000e+00> : vector<16x32xf32>
    %252 = tpu.matmul %250, %251, %cst_99 {dimension_numbers = #tpu.dot_dimension_numbers<[1], [0], [0], [1], [0, 0, 1, 1], [], []>} : vector<16x8xf32>, vector<8x32xf32>, vector<16x32xf32> -> vector<16x32xf32>
    %253 = arith.addf %232, %252 : vector<16x32xf32>
    %254 = vector.extract_strided_slice %189 {offsets = [0, 0, 24], sizes = [2, 8, 8], strides = [1, 1, 1]} : vector<2x8x96xf32> to vector<2x8x8xf32>
    %255 = vector.extract_strided_slice %189 {offsets = [0, 0, 56], sizes = [2, 8, 8], strides = [1, 1, 1]} : vector<2x8x96xf32> to vector<2x8x8xf32>
    %256 = vector.extract_strided_slice %189 {offsets = [0, 0, 88], sizes = [2, 8, 8], strides = [1, 1, 1]} : vector<2x8x96xf32> to vector<2x8x8xf32>
    "tpu.trace_start"() <{level = 10 : i32, message = "bqd,bkd->bqk"}> : () -> ()
    %cst_100 = arith.constant dense<0.000000e+00> : vector<2x8x8xf32>
    %257 = tpu.matmul %254, %255, %cst_100 {dimension_numbers = #tpu.dot_dimension_numbers<[2], [2], [1], [1], [0, 0, 0, 1, 1, 1], [0], [0]>} : vector<2x8x8xf32>, vector<2x8x8xf32>, vector<2x8x8xf32> -> vector<2x8x8xf32>
    "tpu.trace_stop"() : () -> ()
    %cst_101 = arith.constant 0.353553385 : f32
    %258 = vector.broadcast %cst_101 : f32 to vector<2x8x8xf32>
    %259 = arith.mulf %257, %258 : vector<2x8x8xf32>
    %cst_102 = arith.constant dense<0xFF800000> : vector<2x8xf32>
    %260 = vector.multi_reduction <maximumf>, %259, %cst_102 [2] : vector<2x8x8xf32> to vector<2x8xf32>
    %261 = vector.shape_cast %260 : vector<2x8xf32> to vector<2x8x1xf32>
    %262 = vector.broadcast %261 : vector<2x8x1xf32> to vector<2x8x8xf32>
    %263 = arith.subf %259, %262 : vector<2x8x8xf32>
    %264 = math.exp %263 : vector<2x8x8xf32>
    %cst_103 = arith.constant dense<0.000000e+00> : vector<2x8xf32>
    %265 = vector.multi_reduction <add>, %264, %cst_103 [2] : vector<2x8x8xf32> to vector<2x8xf32>
    %266 = vector.shape_cast %265 : vector<2x8xf32> to vector<2x8x1xf32>
    %267 = tpu.reciprocal %266 : vector<2x8x1xf32> -> vector<2x8x1xf32>
    %268 = vector.broadcast %267 : vector<2x8x1xf32> to vector<2x8x8xf32>
    %269 = arith.mulf %264, %268 : vector<2x8x8xf32>
    "tpu.trace_start"() <{level = 10 : i32, message = "bqk,bkd->bqd"}> : () -> ()
    %cst_104 = arith.constant dense<0.000000e+00> : vector<2x8x8xf32>
    %270 = tpu.matmul %269, %256, %cst_104 {dimension_numbers = #tpu.dot_dimension_numbers<[2], [1], [1], [2], [0, 0, 0, 1, 1, 2], [0], [0]>} : vector<2x8x8xf32>, vector<2x8x8xf32>, vector<2x8x8xf32> -> vector<2x8x8xf32>
    "tpu.trace_stop"() : () -> ()
    %271 = vector.shape_cast %270 : vector<2x8x8xf32> to vector<16x8xf32>
    %272 = vector.extract_strided_slice %171 {offsets = [24, 0], sizes = [8, 32], strides = [1, 1]} : vector<32x32xf32> to vector<8x32xf32>
    %cst_105 = arith.constant dense<0.000000e+00> : vector<16x32xf32>
    %273 = tpu.matmul %271, %272, %cst_105 {dimension_numbers = #tpu.dot_dimension_numbers<[1], [0], [0], [1], [0, 0, 1, 1], [], []>} : vector<16x8xf32>, vector<8x32xf32>, vector<16x32xf32> -> vector<16x32xf32>
    %274 = arith.addf %253, %273 : vector<16x32xf32>
    %275 = vector.broadcast %180 : vector<1x32xf32> to vector<16x32xf32>
    %276 = arith.addf %274, %275 : vector<16x32xf32>
    %277 = arith.addf %165, %276 : vector<16x32xf32>
    %cst_106 = arith.constant dense<0.000000e+00> : vector<16xf32>
    %278 = vector.multi_reduction <add>, %277, %cst_106 [1] : vector<16x32xf32> to vector<16xf32>
    %279 = vector.shape_cast %278 : vector<16xf32> to vector<16x1xf32>
    %cst_107 = arith.constant 3.200000e+01 : f32
    %280 = vector.broadcast %cst_107 : f32 to vector<16x1xf32>
    %281 = arith.divf %279, %280 : vector<16x1xf32>
    %282 = vector.broadcast %281 : vector<16x1xf32> to vector<16x32xf32>
    %283 = arith.subf %277, %282 : vector<16x32xf32>
    %284 = arith.mulf %283, %283 : vector<16x32xf32>
    %cst_108 = arith.constant dense<0.000000e+00> : vector<16xf32>
    %285 = vector.multi_reduction <add>, %284, %cst_108 [1] : vector<16x32xf32> to vector<16xf32>
    %286 = vector.shape_cast %285 : vector<16xf32> to vector<16x1xf32>
    %cst_109 = arith.constant 3.200000e+01 : f32
    %287 = vector.broadcast %cst_109 : f32 to vector<16x1xf32>
    %288 = arith.divf %286, %287 : vector<16x1xf32>
    %289 = vector.broadcast %281 : vector<16x1xf32> to vector<16x32xf32>
    %290 = arith.subf %277, %289 : vector<16x32xf32>
    %cst_110 = arith.constant 9.99999974E-6 : f32
    %291 = vector.broadcast %cst_110 : f32 to vector<16x1xf32>
    %292 = arith.addf %288, %291 : vector<16x1xf32>
    %293 = math.rsqrt %292 : vector<16x1xf32>
    %294 = vector.broadcast %293 : vector<16x1xf32> to vector<16x32xf32>
    %295 = arith.mulf %290, %294 : vector<16x32xf32>
    %296 = vector.broadcast %182 : vector<1x32xf32> to vector<16x32xf32>
    %297 = arith.mulf %295, %296 : vector<16x32xf32>
    %298 = vector.broadcast %183 : vector<1x32xf32> to vector<16x32xf32>
    %299 = arith.addf %297, %298 : vector<16x32xf32>
    %cst_111 = arith.constant dense<0.000000e+00> : vector<16x64xf32>
    %300 = tpu.matmul %299, %173, %cst_111 {dimension_numbers = #tpu.dot_dimension_numbers<[1], [0], [0], [1], [0, 0, 1, 1], [], []>} : vector<16x32xf32>, vector<32x64xf32>, vector<16x64xf32> -> vector<16x64xf32>
    %301 = vector.broadcast %175 : vector<1x64xf32> to vector<16x64xf32>
    %302 = arith.addf %300, %301 : vector<16x64xf32>
    %cst_112 = arith.constant 0.000000e+00 : f32
    %303 = vector.broadcast %cst_112 : f32 to vector<16x64xf32>
    %304 = arith.maximumf %302, %303 : vector<16x64xf32>
    %cst_113 = arith.constant dense<0.000000e+00> : vector<16x32xf32>
    %305 = tpu.matmul %304, %177, %cst_113 {dimension_numbers = #tpu.dot_dimension_numbers<[1], [0], [0], [1], [0, 0, 1, 1], [], []>} : vector<16x64xf32>, vector<64x32xf32>, vector<16x32xf32> -> vector<16x32xf32>
    %306 = vector.broadcast %181 : vector<1x32xf32> to vector<16x32xf32>
    %307 = arith.addf %305, %306 : vector<16x32xf32>
    %308 = arith.addf %299, %307 : vector<16x32xf32>
    %cst_114 = arith.constant dense<0.000000e+00> : vector<16xf32>
    %309 = vector.multi_reduction <add>, %308, %cst_114 [1] : vector<16x32xf32> to vector<16xf32>
    %310 = vector.shape_cast %309 : vector<16xf32> to vector<16x1xf32>
    %cst_115 = arith.constant 3.200000e+01 : f32
    %311 = vector.broadcast %cst_115 : f32 to vector<16x1xf32>
    %312 = arith.divf %310, %311 : vector<16x1xf32>
    %313 = vector.broadcast %312 : vector<16x1xf32> to vector<16x32xf32>
    %314 = arith.subf %308, %313 : vector<16x32xf32>
    %315 = arith.mulf %314, %314 : vector<16x32xf32>
    %cst_116 = arith.constant dense<0.000000e+00> : vector<16xf32>
    %316 = vector.multi_reduction <add>, %315, %cst_116 [1] : vector<16x32xf32> to vector<16xf32>
    %317 = vector.shape_cast %316 : vector<16xf32> to vector<16x1xf32>
    %cst_117 = arith.constant 3.200000e+01 : f32
    %318 = vector.broadcast %cst_117 : f32 to vector<16x1xf32>
    %319 = arith.divf %317, %318 : vector<16x1xf32>
    %320 = vector.broadcast %312 : vector<16x1xf32> to vector<16x32xf32>
    %321 = arith.subf %308, %320 : vector<16x32xf32>
    %cst_118 = arith.constant 9.99999974E-6 : f32
    %322 = vector.broadcast %cst_118 : f32 to vector<16x1xf32>
    %323 = arith.addf %319, %322 : vector<16x1xf32>
    %324 = math.rsqrt %323 : vector<16x1xf32>
    %325 = vector.broadcast %324 : vector<16x1xf32> to vector<16x32xf32>
    %326 = arith.mulf %321, %325 : vector<16x32xf32>
    %327 = vector.broadcast %184 : vector<1x32xf32> to vector<16x32xf32>
    %328 = arith.mulf %326, %327 : vector<16x32xf32>
    %329 = vector.broadcast %185 : vector<1x32xf32> to vector<16x32xf32>
    %330 = arith.addf %328, %329 : vector<16x32xf32>
    %c0_119 = arith.constant 0 : index
    %c0_120 = arith.constant 0 : index
    %331 = vector.load %arg8[%c0_119, %c0_120] : memref<2x32xf32, #tpu.memory_space<vmem>>, vector<1x32xf32>
    %c1_121 = arith.constant 1 : index
    %c0_122 = arith.constant 0 : index
    %332 = vector.load %arg8[%c1_121, %c0_122] : memref<2x32xf32, #tpu.memory_space<vmem>>, vector<1x32xf32>
    %cst_123 = arith.constant dense<0.000000e+00> : vector<16xf32>
    %333 = vector.multi_reduction <add>, %330, %cst_123 [1] : vector<16x32xf32> to vector<16xf32>
    %334 = vector.shape_cast %333 : vector<16xf32> to vector<16x1xf32>
    %cst_124 = arith.constant 3.200000e+01 : f32
    %335 = vector.broadcast %cst_124 : f32 to vector<16x1xf32>
    %336 = arith.divf %334, %335 : vector<16x1xf32>
    %337 = vector.broadcast %336 : vector<16x1xf32> to vector<16x32xf32>
    %338 = arith.subf %330, %337 : vector<16x32xf32>
    %339 = arith.mulf %338, %338 : vector<16x32xf32>
    %cst_125 = arith.constant dense<0.000000e+00> : vector<16xf32>
    %340 = vector.multi_reduction <add>, %339, %cst_125 [1] : vector<16x32xf32> to vector<16xf32>
    %341 = vector.shape_cast %340 : vector<16xf32> to vector<16x1xf32>
    %cst_126 = arith.constant 3.200000e+01 : f32
    %342 = vector.broadcast %cst_126 : f32 to vector<16x1xf32>
    %343 = arith.divf %341, %342 : vector<16x1xf32>
    %344 = vector.broadcast %336 : vector<16x1xf32> to vector<16x32xf32>
    %345 = arith.subf %330, %344 : vector<16x32xf32>
    %cst_127 = arith.constant 9.99999974E-6 : f32
    %346 = vector.broadcast %cst_127 : f32 to vector<16x1xf32>
    %347 = arith.addf %343, %346 : vector<16x1xf32>
    %348 = math.rsqrt %347 : vector<16x1xf32>
    %349 = vector.broadcast %348 : vector<16x1xf32> to vector<16x32xf32>
    %350 = arith.mulf %345, %349 : vector<16x32xf32>
    %351 = vector.broadcast %331 : vector<1x32xf32> to vector<16x32xf32>
    %352 = arith.mulf %350, %351 : vector<16x32xf32>
    %353 = vector.broadcast %332 : vector<1x32xf32> to vector<16x32xf32>
    %354 = arith.addf %352, %353 : vector<16x32xf32>
    %c0_128 = arith.constant 0 : index
    %c0_129 = arith.constant 0 : index
    %355 = vector.load %arg9[%c0_128, %c0_129] : memref<16x32xf32, #tpu.memory_space<vmem>>, vector<16x32xf32>
    tpu.vector_store %arg9[%c0_128, %c0_129], %354 {strides = array<i32>} : memref<16x32xf32, #tpu.memory_space<vmem>>, vector<16x32xf32>,
    return
  }
}

</mosaic_0001>

<bundles_post_ra>
// kernel: encoder_forward.1
= control target key start
LH: loop header
LB: loop body
LE: loop exit
PB: predicated region body
PF: predicated region fallthrough
CT: control target
= control target key end

     0   :  { %s2825_s0 = inlined_call_operand.vmem [shape: f32[16,32], index: 0, kind: input, shape index: {}]   ;;  %s2826_s1 = inlined_call_operand.vmem [shape: f32[2,32,96], index: 1, kind: input, shape index: {}]   ;;  %s2827_s2 = inlined_call_operand.vmem [shape: f32[2,1,96], index: 2, kind: input, shape index: {}]   ;;  %s2828_s3 = inlined_call_operand.vmem [shape: f32[2,32,32], index: 3, kind: input, shape index: {}]   ;;  %s2829_s4 = inlined_call_operand.vmem [shape: f32[2,32,64], index: 4, kind: input, shape index: {}]   ;;  %s2830_s5 = inlined_call_operand.vmem [shape: f32[2,1,64], index: 5, kind: input, shape index: {}]   ;;  %s2831_s6 = inlined_call_operand.vmem [shape: f32[2,64,32], index: 6, kind: input, shape index: {}]   ;;  %s2832_s7 = inlined_call_operand.vmem [shape: f32[2,6,32], index: 7, kind: input, shape index: {}]   ;;  %s2833_s8 = inlined_call_operand.vmem [shape: f32[2,32], index: 8, kind: input, shape index: {}]   ;;  %s2834_s9 = inlined_call_operand.hbm [shape: f32[16,32], index: 9, kind: output, shape index: {}]  }
   0x1   :  { %v38_v0 = vld [vmem:[%s2826_s1 + $0x18] sm:$0xff]  ;;  %v37_v1 = vld [vmem:[%s2826_s1 + $0x10] sm:$0xff]  ;;  %v36_v2 = vld [vmem:[%s2826_s1 + $0x8] sm:$0xff] }
   0x2   :  { %80 = vmatpush.msra.mxu0 %v38_v0 }
   0x4   :  { %81 = vmatpush.msra.mxu0 %v37_v1 }
   0x5   :  { %14 = vsyncpa [#allocation3], 0  ;;  %v35_v3 = vld [vmem:[%s2826_s1] sm:$0xff]  ;;  %vm61_vm0 = vcmask 261120   ;;  %s2308_s21 = smov 64   ;;  %s2309_s22 = smov 96  }
   0x6   :  { %82 = vmatpush.msra.mxu0 %v36_v2  ;;  %v2388_v4 = vld [vmem:[%s2825_s0] sm:$0xff]  ;;  %s2310_s23 = smov 88   ;;  %s2311_s24 = smov 120   ;;  %vm94_vm1 = vcmask 64512   ;;  %v2412_v11 = vld [vmem:[%s2825_s0 + $0x8] sm:$0xff] }
   0x7   :  { %v2190_v5 = vld [vmem:[%s2827_s2] ss:$0 sm:$0xff]  ;;  %s2312_s28 = smov 80   ;;  %s2313_s29 = smov 56  }
   0x8   :  { %83 = vmatpush.msra.mxu0 %v35_v3  ;;  %v40_v38 = vld [vmem:[%s2828_s3] sm:$0xff]  ;;  %s2314_s30 = smov 112   ;;  %s2315_s10 = smov 72  }
   0x9   :  { %2076 = vmatmul.msk.f32.vlgmr.msra.gmra.mxu0 %vm61_vm0, %v2388_v4  ;;  %s2316_s11 = smov 104   ;;  %s2317_s14 = smov 48  }
   0xa   :  { %456 = vmatpush.msrb.mxu0 %v40_v38  ;;  %v41_v38 = vld [vmem:[%s2828_s3 + $0x8] sm:$0xff]  ;;  %s2318_s15 = smov 40   ;;  %s2064_s27 = sshll.u32 %s2834_s9, 4  ;;  %s2065_s27 = int_to_ptr.hbm [resolvable:$true] %s2064_s27 }
   0xb   :  { %s2321_s12 = smov 128   ;;  %s2322_s13 = smov 8  }
  0x11   :  { %2077 = vmatmul.msk.f32.gmra.mxu0 %vm61_vm0, %v2412_v11 }
  0x86   :  { %v85_v6 = vpop.f32.mrf.mxu0 }
  0x87   :  { %v2395_v7 = vadd.f32 %v2190_v5, %v85_v6 }
  0x89   :  { %196 = vrot.lane.b32.xlu2 %v2395_v7, %s2308_s21  ;;  %92 = vrot.lane.b32.xlu0 %v2395_v7, %s2309_s22 }
  0x8e   :  { %v88_v15 = vpop.f32.mrf.mxu0 }
  0x8f   :  { %v2417_v16 = vadd.f32 %v2190_v5, %v88_v15 }
  0x91   :  { %250 = vrot.lane.b32.xlu2 %v2395_v7, %s2310_s23 }
  0x99   :  { %248 = vrot.lane.b32.xlu2 %v2395_v7, %s2311_s24 }
  0xa1   :  { %278 = vrot.lane.b32.xlu2 %v2417_v16, %s2310_s23 }
  0xa9   :  { %276 = vrot.lane.b32.xlu2 %v2417_v16, %s2311_s24 }
  0xe3   :  { %v197_v8 = vpop.permute.xlu2 %196 }
  0xeb   :  { %v251_v10 = vpop.permute.xlu2 %250 }
  0xf3   :  { %v249_v32 = vpop.permute.xlu2 %248 }
  0xfb   :  { %v93_v9 = vpop.permute.xlu0 %92  ;;  %v279_v36 = vpop.permute.xlu2 %278 }
  0xfc   :  { %2078 = vmatpush.xpose.msk.msra.mxu1 %vm94_vm1, %v93_v9 }
  0xff   :  { %2079 = vmatmul.msk.f32.vlgmr.msra.gmra.mxu1 %vm94_vm1, %v2395_v7 }
 0x100   :  { %217 = vmatpush.msrb.mxu1 %v197_v8 }
 0x102   :  { %2084 = vmatpush.xpose.msk.msra.mxu1 %vm94_vm1, %v251_v10 }
 0x103   :  { %v277_v37 = vpop.permute.xlu2 %276 }
 0x17c   :  { %v116_v12 = vpop.f32.mrf.mxu1 }
 0x17d   :  { %v146_v13 = vmul.f32 0.35355338, %v116_v12 }
 0x17f   :  { %v148_v14 = vsel %vm94_vm1, %v146_v13, -inf }
 0x180   :  { %149 = vmax.xlane.f32.xlu0 %v148_v14 }
 0x1f3   :  { %v150_v17 = vpop.xlane.xlu0 %149 }
 0x1f4   :  { %v154_v18 = vsub.f32 %v146_v13, %v150_v17 }
 0x1f6   :  { %v156_v19 = vmul.f32 1.442695, %v154_v18 }
 0x1f8   :  { %2196 = vpow2.f32 %v156_v19 }
 0x1fe   :  { %v2197_v20 = vpop.eup %2196 }
 0x1ff   :  { %v160_v21 = vsel %vm94_vm1, %v2197_v20, 0.0 }
 0x200   :  { %161 = vadd.xlane.f32.xlu1 %v160_v21 }
 0x219   :  { %120 = vrot.lane.b32.xlu1 %v2417_v16, %s2309_s22 }
 0x273   :  { %v162_v22 = vpop.xlane.xlu1 %161 }
 0x274   :  { %2198 = vrcp.f32 %v162_v22  ;;  %v177_v26 = vand.u32 2147483648, %v162_v22  ;;  %v175_v28 = vand.u32 2147483647, %v162_v22  ;;  %vm171_vm3 = vweird.f32 %v162_v22 }
 0x276   :  { %v178_v30 = vor.u32 1.1754944e-38, %v177_v26  ;;  %vm176_vm5 = vcmp.eq.f32.partialorder %v175_v28, 8.507059e+37 }
 0x27a   :  { %v2199_v23 = vpop.eup %2198 }
 0x27b   :  { %v167_v24 = vmul.f32 %v2199_v23, %v162_v22  ;;  %vm172_vm2 = vweird.f32 %v2199_v23 }
 0x27c   :  { %vm173_vm4 = vmor %vm171_vm3, %vm172_vm2 }
 0x27d   :  { %v168_v25 = vsub.f32 1.0, %v167_v24 }
 0x27f   :  { %v169_v27 = vmul.f32 %v2199_v23, %v168_v25 }
 0x281   :  { %v170_v29 = vadd.f32 %v2199_v23, %v169_v27 }
 0x283   :  { %v174_v31 = vsel %vm173_vm4, %v2199_v23, %v170_v29 }
 0x284   :  { %v179_v33 = vsel %vm176_vm5, %v178_v30, %v174_v31 }
 0x285   :  { %v194_v34 = vmul.f32 %v2197_v20, %v179_v33 }
 0x287   :  { %2082 = vmatmul.msk.f32.vlgmr.msrb.gmra.mxu1 %vm94_vm1, %v194_v34 }
 0x28b   :  { %v121_v35 = vpop.permute.xlu1 %120 }
 0x28c   :  { %2080 = vmatpush.xpose.msk.msra.mxu2 %vm94_vm1, %v121_v35 }
 0x28f   :  { %2081 = vmatmul.msk.f32.vlgmr.msra.gmra.mxu2 %vm94_vm1, %v2417_v16  ;;  %2085 = vmatmul.msk.f32.vlgmr.msra.gmra.mxu1 %vm94_vm1, %v249_v32 }
 0x290   :  { %2086 = vmatpush.xpose.msk.msrb.mxu2 %vm94_vm1, %v279_v36 }
 0x294   :  { %427 = vmatpush.msra.mxu2 %v41_v38 }
 0x297   :  { %2087 = vmatmul.msk.f32.vlgmr.msrb.gmra.mxu2 %vm94_vm1, %v277_v37 }
 0x304   :  { %v219_v39 = vpop.f32.mrf.mxu1 }
 0x305   :  { %2092 = vmatmul.msk.f32.vlgmr.msrb.gmra.mxu0 %vm94_vm1, %v219_v39 }
 0x30c   :  { %v273_v40 = vpop.f32.mrf.mxu1 }
 0x30d   :  { %v304_v41 = vmul.f32 0.35355338, %v273_v40 }
 0x30f   :  { %v306_v42 = vsel %vm94_vm1, %v304_v41, -inf }
 0x310   :  { %307 = vmax.xlane.f32.xlu2 %v306_v42 }
 0x312   :  { %v143_v43 = vpop.f32.mrf.mxu2 }
 0x313   :  { %v147_v44 = vmul.f32 0.35355338, %v143_v43 }
 0x315   :  { %v151_v45 = vsel %vm94_vm1, %v147_v44, -inf }
 0x316   :  { %152 = vmax.xlane.f32.xlu1 %v151_v45 }
 0x31a   :  { %v301_v62 = vpop.f32.mrf.mxu2 }
 0x31b   :  { %v305_v63 = vmul.f32 0.35355338, %v301_v62 }
 0x31d   :  { %v309_v2 = vsel %vm94_vm1, %v305_v63, -inf }
 0x328   :  { %466 = vrot.lane.b32.xlu2 %v2395_v7, %s2312_s28 }
 0x32f   :  { %354 = vrot.lane.b32.xlu1 %v2395_v7, %s2313_s29 }
 0x330   :  { %380 = vrot.lane.b32.xlu2 %v2417_v16, %s2313_s29 }
 0x338   :  { %494 = vrot.lane.b32.xlu2 %v2417_v16, %s2312_s28 }
 0x340   :  { %492 = vrot.lane.b32.xlu2 %v2417_v16, %s2314_s30 }
 0x348   :  { %655 = vrot.lane.b32.xlu2 %v2395_v7, %s2315_s10 }
 0x383   :  { %v308_v46 = vpop.xlane.xlu2 %307 }
 0x384   :  { %v312_v57 = vsub.f32 %v304_v41, %v308_v46 }
 0x386   :  { %v314_v58 = vmul.f32 1.442695, %v312_v57 }
 0x389   :  { %v153_v47 = vpop.xlane.xlu1 %152 }
 0x38a   :  { %v155_v48 = vsub.f32 %v147_v44, %v153_v47 }
 0x38b   :  { %v467_v49 = vpop.permute.xlu2 %466 }
 0x38c   :  { %v158_v50 = vmul.f32 1.442695, %v155_v48 }
 0x38e   :  { %2200 = vpow2.f32 %v158_v50 }
 0x38f   :  { %2202 = vpow2.f32 %v314_v58 }
 0x393   :  { %v381_v51 = vpop.permute.xlu2 %380 }
 0x394   :  { %v2201_v52 = vpop.eup %2200  ;;  %401 = vmatpush.msrb.mxu1 %v381_v51 }
 0x395   :  { %v163_v53 = vsel %vm94_vm1, %v2201_v52, 0.0  ;;  %v2203_v59 = vpop.eup %2202 }
 0x396   :  { %164 = vadd.xlane.f32.xlu0 %v163_v53  ;;  %v318_v60 = vsel %vm94_vm1, %v2203_v59, 0.0 }
 0x39b   :  { %v495_v54 = vpop.permute.xlu2 %494 }
 0x39c   :  { %2096 = vmatpush.xpose.msk.msra.mxu1 %vm94_vm1, %v495_v54 }
 0x3a1   :  { %v355_v17 = vpop.permute.xlu1 %354 }
 0x3a3   :  { %v2453_v55 = vpop.permute.xlu2 %492 }
 0x3aa   :  { %222 = vrot.lane.b32.xlu0 %v2417_v16, %s2308_s21 }
 0x3ab   :  { %v656_v56 = vpop.permute.xlu2 %655 }
 0x3ac   :  { %2102 = vmatpush.xpose.msk.msra.mxu0 %vm94_vm1, %v656_v56 }
 0x3d4   :  { %319 = vadd.xlane.f32.xlu0 %v318_v60 }
 0x3e8   :  { %464 = vrot.lane.b32.xlu0 %v2395_v7, %s2314_s30 }
 0x409   :  { %v165_v61 = vpop.xlane.xlu0 %164 }
 0x40a   :  { %2204 = vrcp.f32 %v165_v61  ;;  %v191_v5 = vand.u32 2147483648, %v165_v61  ;;  %v189_v8 = vand.u32 2147483647, %v165_v61  ;;  %vm185_vm7 = vweird.f32 %v165_v61 }
 0x40c   :  { %v192_v10 = vor.u32 1.1754944e-38, %v191_v5  ;;  %vm190_vm9 = vcmp.eq.f32.partialorder %v189_v8, 8.507059e+37 }
 0x410   :  { %v2205_v0 = vpop.eup %2204 }
 0x411   :  { %v181_v1 = vmul.f32 %v2205_v0, %v165_v61  ;;  %vm186_vm6 = vweird.f32 %v2205_v0  ;;  %v2486_v61 = vpop.f32.mrf.mxu0 }
 0x412   :  { %310 = vmax.xlane.f32.xlu0 %v309_v2  ;;  %vm187_vm8 = vmor %vm185_vm7, %vm186_vm6 }
 0x413   :  { %v182_v3 = vsub.f32 1.0, %v181_v1 }
 0x415   :  { %v183_v6 = vmul.f32 %v2205_v0, %v182_v3 }
 0x417   :  { %v184_v9 = vadd.f32 %v2205_v0, %v183_v6 }
 0x419   :  { %v188_v12 = vsel %vm187_vm8, %v2205_v0, %v184_v9 }
 0x41a   :  { %v193_v13 = vsel %vm190_vm9, %v192_v10, %v188_v12 }
 0x41b   :  { %v195_v14 = vmul.f32 %v2201_v52, %v193_v13 }
 0x41c   :  { %v223_v15 = vpop.permute.xlu0 %222 }
 0x41d   :  { %243 = vmatpush.msra.mxu3 %v223_v15 }
 0x41e   :  { %2083 = vmatmul.msk.f32.vlgmr.msra.gmra.mxu3 %vm94_vm1, %v195_v14 }
 0x41f   :  { %375 = vmatpush.msrb.mxu3 %v355_v17 }
 0x421   :  { %2094 = vmatpush.xpose.msk.msra.mxu3 %vm94_vm1, %v467_v49 }
 0x426   :  { %653 = vrot.lane.b32.xlu0 %v2395_v7, %s2316_s11 }
 0x42e   :  { %683 = vrot.lane.b32.xlu0 %v2417_v16, %s2315_s10 }
 0x436   :  { %681 = vrot.lane.b32.xlu0 %v2417_v16, %s2316_s11 }
 0x447   :  { %v320_v18 = vpop.xlane.xlu0 %319 }
 0x448   :  { %2206 = vrcp.f32 %v320_v18  ;;  %v335_v22 = vand.u32 2147483648, %v320_v18  ;;  %v333_v24 = vand.u32 2147483647, %v320_v18  ;;  %vm329_vm11 = vweird.f32 %v320_v18 }
 0x44a   :  { %v336_v26 = vor.u32 1.1754944e-38, %v335_v22  ;;  %vm334_vm13 = vcmp.eq.f32.partialorder %v333_v24, 8.507059e+37 }
 0x44e   :  { %v2207_v19 = vpop.eup %2206 }
 0x44f   :  { %v325_v20 = vmul.f32 %v2207_v19, %v320_v18  ;;  %vm330_vm10 = vweird.f32 %v2207_v19 }
 0x450   :  { %vm331_vm12 = vmor %vm329_vm11, %vm330_vm10 }
 0x451   :  { %v326_v21 = vsub.f32 1.0, %v325_v20 }
 0x453   :  { %v327_v23 = vmul.f32 %v2207_v19, %v326_v21 }
 0x455   :  { %v328_v25 = vadd.f32 %v2207_v19, %v327_v23 }
 0x457   :  { %v332_v27 = vsel %vm331_vm12, %v2207_v19, %v328_v25 }
 0x458   :  { %v337_v28 = vsel %vm334_vm13, %v336_v26, %v332_v27 }
 0x459   :  { %v352_v29 = vmul.f32 %v2203_v59, %v337_v28 }
 0x45a   :  { %v465_v30 = vpop.permute.xlu0 %464 }
 0x45b   :  { %2088 = vmatmul.msk.f32.vlgmr.msrb.gmra.mxu3 %vm94_vm1, %v352_v29 }
 0x463   :  { %2095 = vmatmul.msk.f32.vlgmr.msra.gmra.mxu3 %vm94_vm1, %v465_v30 }
 0x485   :  { %v311_v31 = vpop.xlane.xlu0 %310 }
 0x486   :  { %v313_v32 = vsub.f32 %v305_v63, %v311_v31 }
 0x488   :  { %v316_v33 = vmul.f32 1.442695, %v313_v32 }
 0x48a   :  { %2208 = vpow2.f32 %v316_v33  ;;  %v42_v33 = vld [vmem:[%s2828_s3 + $0x10] sm:$0xff] }
 0x48b   :  { %643 = vmatpush.msrb.mxu2 %v42_v33 }
 0x490   :  { %v2209_v34 = vpop.eup %2208 }
 0x491   :  { %v321_v35 = vsel %vm94_vm1, %v2209_v34, 0.0 }
 0x492   :  { %322 = vadd.xlane.f32.xlu1 %v321_v35 }
 0x498   :  { %v654_v37 = vpop.permute.xlu0 %653 }
 0x4a0   :  { %v684_v20 = vpop.permute.xlu0 %683 }
 0x4a1   :  { %v245_v36 = vpop.f32.mrf.mxu3 }
 0x4a2   :  { %2093 = vmatmul.msk.f32.gmra.mxu0 %vm94_vm1, %v245_v36 }
 0x4aa   :  { %2103 = vmatmul.msk.f32.vlgmr.msra.gmra.mxu0 %vm94_vm1, %v654_v37 }
 0x4de   :  { %v377_v39 = vpop.f32.mrf.mxu3 }
 0x4df   :  { %2090 = vmatmul.msk.f32.vlgmr.msra.gmra.mxu2 %vm94_vm1, %v377_v39 }
 0x4e6   :  { %v489_v40 = vpop.f32.mrf.mxu3 }
 0x4e7   :  { %v520_v41 = vmul.f32 0.35355338, %v489_v40 }
 0x4e9   :  { %v522_v42 = vsel %vm94_vm1, %v520_v41, -inf }
 0x4ea   :  { %523 = vmax.xlane.f32.xlu2 %v522_v42 }
 0x505   :  { %v323_v43 = vpop.xlane.xlu1 %322 }
 0x506   :  { %2210 = vrcp.f32 %v323_v43  ;;  %v349_v47 = vand.u32 2147483648, %v323_v43  ;;  %v347_v49 = vand.u32 2147483647, %v323_v43  ;;  %vm343_vm15 = vweird.f32 %v323_v43 }
 0x508   :  { %v350_v51 = vor.u32 1.1754944e-38, %v349_v47  ;;  %vm348_vm3 = vcmp.eq.f32.partialorder %v347_v49, 8.507059e+37 }
 0x50c   :  { %v2211_v44 = vpop.eup %2210 }
 0x50d   :  { %v339_v45 = vmul.f32 %v2211_v44, %v323_v43  ;;  %vm344_vm14 = vweird.f32 %v2211_v44 }
 0x50e   :  { %vm345_vm2 = vmor %vm343_vm15, %vm344_vm14 }
 0x50f   :  { %v340_v46 = vsub.f32 1.0, %v339_v45 }
 0x511   :  { %v341_v48 = vmul.f32 %v2211_v44, %v340_v46 }
 0x513   :  { %v342_v50 = vadd.f32 %v2211_v44, %v341_v48 }
 0x515   :  { %v346_v52 = vsel %vm345_vm2, %v2211_v44, %v342_v50 }
 0x516   :  { %v351_v53 = vsel %vm348_vm3, %v350_v51, %v346_v52 }
 0x517   :  { %v353_v54 = vmul.f32 %v2209_v34, %v351_v53 }
 0x519   :  { %2089 = vmatmul.msk.f32.vlgmr.msrb.gmra.mxu1 %vm94_vm1, %v353_v54 }
 0x51f   :  { %v2489_v63 = vpop.f32.mrf.mxu0 }
 0x521   :  { %2097 = vmatmul.msk.f32.vlgmr.msra.gmra.mxu1 %vm94_vm1, %v2453_v55 }
 0x527   :  { %v678_v2 = vpop.f32.mrf.mxu0 }
 0x528   :  { %v709_v3 = vmul.f32 0.35355338, %v678_v2 }
 0x52a   :  { %v711_v5 = vsel %vm94_vm1, %v709_v3, -inf }
 0x55d   :  { %v524_v56 = vpop.xlane.xlu2 %523 }
 0x55e   :  { %v528_v57 = vsub.f32 %v520_v41, %v524_v56 }
 0x560   :  { %v530_v58 = vmul.f32 1.442695, %v528_v57 }
 0x562   :  { %2212 = vpow2.f32 %v530_v58 }
 0x568   :  { %v2213_v59 = vpop.eup %2212 }
 0x569   :  { %v534_v60 = vsel %vm94_vm1, %v2213_v59, 0.0 }
 0x56a   :  { %535 = vadd.xlane.f32.xlu1 %v534_v60 }
 0x583   :  { %570 = vrot.lane.b32.xlu1 %v2395_v7, %s2317_s14 }
 0x596   :  { %v403_v62 = vpop.f32.mrf.mxu1 }
 0x597   :  { %2091 = vmatmul.msk.f32.gmra.mxu2 %vm94_vm1, %v403_v62 }
 0x59e   :  { %v517_v55 = vpop.f32.mrf.mxu1 }
 0x59f   :  { %v521_v0 = vmul.f32 0.35355338, %v517_v55 }
 0x5a1   :  { %v525_v1 = vsel %vm94_vm1, %v521_v0, -inf }
 0x5a2   :  { %526 = vmax.xlane.f32.xlu0 %v525_v1 }
 0x5ad   :  { %712 = vmax.xlane.f32.xlu1 %v711_v5 }
 0x5b6   :  { %759 = vrot.lane.b32.xlu0 %v2395_v7, %s2318_s15  ;;  %v682_v7 = vpop.permute.xlu0 %681 }
 0x5dd   :  { %v536_v6 = vpop.xlane.xlu1 %535 }
 0x5de   :  { %2214 = vrcp.f32 %v536_v6  ;;  %v551_v14 = vand.u32 2147483648, %v536_v6  ;;  %vm545_vm5 = vweird.f32 %v536_v6  ;;  %v549_v15 = vand.u32 2147483647, %v536_v6 }
 0x5e0   :  { %v552_v18 = vor.u32 1.1754944e-38, %v551_v14  ;;  %vm550_vm7 = vcmp.eq.f32.partialorder %v549_v15, 8.507059e+37 }
 0x5e4   :  { %v2215_v8 = vpop.eup %2214 }
 0x5e5   :  { %v541_v9 = vmul.f32 %v2215_v8, %v536_v6  ;;  %vm546_vm4 = vweird.f32 %v2215_v8 }
 0x5e6   :  { %vm547_vm6 = vmor %vm545_vm5, %vm546_vm4 }
 0x5e7   :  { %v542_v10 = vsub.f32 1.0, %v541_v9  ;;  %v43_v9 = vld [vmem:[%s2828_s3 + $0x18] sm:$0xff] }
 0x5e9   :  { %v543_v12 = vmul.f32 %v2215_v8, %v542_v10 }
 0x5eb   :  { %v544_v13 = vadd.f32 %v2215_v8, %v543_v12 }
 0x5ed   :  { %v548_v17 = vsel %vm547_vm6, %v2215_v8, %v544_v13 }
 0x5ee   :  { %v553_v19 = vsel %vm550_vm7, %v552_v18, %v548_v17 }
 0x5ef   :  { %v568_v22 = vmul.f32 %v2213_v59, %v553_v19 }
 0x5f5   :  { %v571_v21 = vpop.permute.xlu1 %570 }
 0x5f6   :  { %591 = vmatpush.msrb.mxu3 %v571_v21 }
 0x5f7   :  { %2098 = vmatmul.msk.f32.vlgmr.msrb.gmra.mxu3 %vm94_vm1, %v568_v22 }
 0x5f8   :  { %2104 = vmatpush.xpose.msk.msra.mxu3 %vm94_vm1, %v684_v20 }
 0x5fc   :  { %832 = vmatpush.msrb.mxu3 %v43_v9 }
 0x5ff   :  { %2105 = vmatmul.msk.f32.vlgmr.msra.gmra.mxu3 %vm94_vm1, %v682_v7 }
 0x615   :  { %v527_v23 = vpop.xlane.xlu0 %526 }
 0x616   :  { %v529_v24 = vsub.f32 %v521_v0, %v527_v23 }
 0x618   :  { %v532_v25 = vmul.f32 1.442695, %v529_v24 }
 0x61a   :  { %2216 = vpow2.f32 %v532_v25  ;;  %v429_v25 = vpop.f32.mrf.mxu2 }
 0x620   :  { %v2217_v26 = vpop.eup %2216  ;;  %v713_v27 = vpop.xlane.xlu1 %712 }
 0x621   :  { %v717_v28 = vsub.f32 %v709_v3, %v713_v27  ;;  %v537_v29 = vsel %vm94_vm1, %v2217_v26, 0.0 }
 0x622   :  { %538 = vadd.xlane.f32.xlu2 %v537_v29  ;;  %v459_v29 = vadd.f32 %v2486_v61, %v429_v25  ;;  %v49_v25 = vld [vmem:[%s2831_s6] sm:$0xff] }
 0x623   :  { %v719_v30 = vmul.f32 1.442695, %v717_v28  ;;  %v2521_v28 = vld [vmem:[%s2832_s7] sm:$0x3f] }
 0x624   :  { %v901_v9 = vperm.slane %v2521_v28, 3 }
 0x625   :  { %2218 = vpow2.f32 %v719_v30 }
 0x628   :  { %v760_v54 = vpop.permute.xlu0 %759 }
 0x62b   :  { %v2219_v31 = vpop.eup %2218 }
 0x62c   :  { %v723_v32 = vsel %vm94_vm1, %v2219_v31, 0.0 }
 0x62d   :  { %724 = vadd.xlane.f32.xlu2 %v723_v32 }
 0x645   :  { %596 = vrot.lane.b32.xlu2 %v2417_v16, %s2317_s14 }
 0x67a   :  { %v593_v34 = vpop.f32.mrf.mxu3 }
 0x67b   :  { %2100 = vmatmul.msk.f32.vlgmr.msrb.gmra.mxu2 %vm94_vm1, %v593_v34 }
 0x682   :  { %v706_v35 = vpop.f32.mrf.mxu3 }
 0x683   :  { %v710_v36 = vmul.f32 0.35355338, %v706_v35 }
 0x685   :  { %v714_v37 = vsel %vm94_vm1, %v710_v36, -inf }
 0x686   :  { %715 = vmax.xlane.f32.xlu1 %v714_v37 }
 0x695   :  { %v539_v38 = vpop.xlane.xlu2 %538 }
 0x696   :  { %2220 = vrcp.f32 %v539_v38  ;;  %v565_v42 = vand.u32 2147483648, %v539_v38  ;;  %v563_v45 = vand.u32 2147483647, %v539_v38  ;;  %vm559_vm9 = vweird.f32 %v539_v38 }
 0x698   :  { %v566_v47 = vor.u32 1.1754944e-38, %v565_v42  ;;  %vm564_vm11 = vcmp.eq.f32.partialorder %v563_v45, 8.507059e+37 }
 0x69c   :  { %v2221_v39 = vpop.eup %2220 }
 0x69d   :  { %v555_v40 = vmul.f32 %v2221_v39, %v539_v38  ;;  %vm560_vm8 = vweird.f32 %v2221_v39  ;;  %v2319_v38 = vmov 32.0  }
 0x69e   :  { %vm561_vm10 = vmor %vm559_vm9, %vm560_vm8 }
 0x69f   :  { %v556_v41 = vsub.f32 1.0, %v555_v40  ;;  %785 = vrot.lane.b32.xlu1 %v2417_v16, %s2318_s15 }
 0x6a0   :  { %v725_v43 = vpop.xlane.xlu2 %724 }
 0x6a1   :  { %v557_v44 = vmul.f32 %v2221_v39, %v556_v41  ;;  %2222 = vrcp.f32 %v725_v43  ;;  %v740_v56 = vand.u32 2147483648, %v725_v43  ;;  %v738_v58 = vand.u32 2147483647, %v725_v43 }
 0x6a2   :  { %vm734_vm13 = vweird.f32 %v725_v43 }
 0x6a3   :  { %v558_v46 = vadd.f32 %v2221_v39, %v557_v44  ;;  %v741_v60 = vor.u32 1.1754944e-38, %v740_v56  ;;  %vm739_vm15 = vcmp.eq.f32.partialorder %v738_v58, 8.507059e+37  ;;  %v47_v56 = vld [vmem:[%s2829_s4 + $0x18] sm:$0xff] }
 0x6a5   :  { %v562_v48 = vsel %vm561_vm10, %v2221_v39, %v558_v46  ;;  %vm939_vm10 = vcmask 523264  }
 0x6a6   :  { %v567_v49 = vsel %vm564_vm11, %v566_v47, %v562_v48 }
 0x6a7   :  { %v2223_v50 = vpop.eup %2222  ;;  %v569_v51 = vmul.f32 %v2217_v26, %v567_v49  ;;  %v432_v26 = vpop.f32.mrf.mxu2 }
 0x6a8   :  { %v730_v52 = vmul.f32 %v2223_v50, %v725_v43  ;;  %v597_v53 = vpop.permute.xlu2 %596  ;;  %vm735_vm12 = vweird.f32 %v2223_v50  ;;  %v462_v49 = vadd.f32 %v2489_v63, %v432_v26  ;;  %v45_v63 = vld [vmem:[%s2829_s4 + $0x8] sm:$0xff]  ;;  %v2191_v26 = vld [vmem:[%s2830_s5] ss:$0 sm:$0xff] }
 0x6a9   :  { %617 = vmatpush.msrb.mxu1 %v597_v53  ;;  %vm736_vm14 = vmor %vm734_vm13, %vm735_vm12 }
 0x6aa   :  { %v731_v16 = vsub.f32 1.0, %v730_v52  ;;  %2099 = vmatmul.msk.f32.vlgmr.msrb.gmra.mxu1 %vm94_vm1, %v569_v51 }
 0x6ab   :  { %780 = vmatpush.msra.mxu1 %v760_v54 }
 0x6ac   :  { %v732_v57 = vmul.f32 %v2223_v50, %v731_v16 }
 0x6ad   :  { %925 = vmatpush.msrb.mxu1 %v47_v56 }
 0x6ae   :  { %v733_v59 = vadd.f32 %v2223_v50, %v732_v57  ;;  %v46_v57 = vld [vmem:[%s2829_s4 + $0x10] sm:$0xff] }
 0x6af   :  { %926 = vmatpush.msrb.mxu1 %v46_v57 }
 0x6b0   :  { %v737_v62 = vsel %vm736_vm14, %v2223_v50, %v733_v59 }
 0x6b1   :  { %v742_v55 = vsel %vm739_vm15, %v741_v60, %v737_v62  ;;  %927 = vmatpush.msrb.mxu1 %v45_v63 }
 0x6b2   :  { %v757_v0 = vmul.f32 %v2219_v31, %v742_v55  ;;  %v842_v31 = vperm.slane %v2521_v28, 0 }
 0x6b4   :  { %2106 = vmatmul.msk.f32.vlgmr.msra.gmra.mxu1 %vm94_vm1, %v757_v0 }
 0x6f9   :  { %v716_v1 = vpop.xlane.xlu1 %715 }
 0x6fa   :  { %v718_v2 = vsub.f32 %v710_v36, %v716_v1 }
 0x6fc   :  { %v721_v3 = vmul.f32 1.442695, %v718_v2 }
 0x6fe   :  { %2224 = vpow2.f32 %v721_v3  ;;  %v645_v27 = vpop.f32.mrf.mxu2 }
 0x6ff   :  { %v651_v30 = vadd.f32 %v645_v27, %v459_v29 }
 0x704   :  { %v2225_v5 = vpop.eup %2224 }
 0x705   :  { %v726_v6 = vsel %vm94_vm1, %v2225_v5, 0.0 }
 0x706   :  { %727 = vadd.xlane.f32.xlu2 %v726_v6 }
 0x711   :  { %v786_v8 = vpop.permute.xlu1 %785 }
 0x712   :  { %806 = vmatpush.msrb.mxu0 %v786_v8 }
 0x727   :  { %v619_v10 = vpop.f32.mrf.mxu1 }
 0x728   :  { %2101 = vmatmul.msk.f32.gmra.mxu2 %vm94_vm1, %v619_v10 }
 0x731   :  { %v782_v12 = vpop.f32.mrf.mxu1 }
 0x732   :  { %2108 = vmatmul.msk.f32.vlgmr.msrb.gmra.mxu3 %vm94_vm1, %v782_v12 }
 0x779   :  { %v728_v13 = vpop.xlane.xlu2 %727 }
 0x77a   :  { %2226 = vrcp.f32 %v728_v13  ;;  %v754_v18 = vand.u32 2147483648, %v728_v13  ;;  %v752_v20 = vand.u32 2147483647, %v728_v13  ;;  %vm748_vm3 = vweird.f32 %v728_v13 }
 0x77b   :  { %2228 = vrcp.f32 %v2319_v38 }
 0x77c   :  { %v755_v22 = vor.u32 1.1754944e-38, %v754_v18  ;;  %vm753_vm5 = vcmp.eq.f32.partialorder %v752_v20, 8.507059e+37  ;;  %v52_v18 = vld [vmem:[%s2831_s6 + $0x18] sm:$0xff] }
 0x780   :  { %v2227_v14 = vpop.eup %2226 }
 0x781   :  { %v744_v15 = vmul.f32 %v2227_v14, %v728_v13  ;;  %vm749_vm2 = vweird.f32 %v2227_v14  ;;  %v2229_v39 = vpop.eup %2228  ;;  %v56_v13 = vld [vmem:[%s2831_s6 + $0x38] sm:$0xff] }
 0x782   :  { %vm750_vm4 = vmor %vm748_vm3, %vm749_vm2  ;;  %v854_v40 = vmul.f32 32.0, %v2229_v39  ;;  %vm858_vm6 = vweird.f32 %v2229_v39  ;;  %954 = vmatpush.msra.mxu2 %v56_v13 }
 0x783   :  { %v745_v17 = vsub.f32 1.0, %v744_v15  ;;  %v54_v15 = vld [vmem:[%s2831_s6 + $0x28] sm:$0xff] }
 0x784   :  { %v855_v41 = vsub.f32 1.0, %v854_v40 }
 0x785   :  { %v746_v19 = vmul.f32 %v2227_v14, %v745_v17  ;;  %v53_v17 = vld [vmem:[%s2831_s6 + $0x20] sm:$0xff] }
 0x786   :  { %v856_v61 = vmul.f32 %v2229_v39, %v855_v41 }
 0x787   :  { %v747_v21 = vadd.f32 %v2227_v14, %v746_v19 }
 0x788   :  { %v857_v42 = vadd.f32 %v2229_v39, %v856_v61 }
 0x789   :  { %v751_v7 = vsel %vm750_vm4, %v2227_v14, %v747_v21  ;;  %v55_v14 = vld [vmem:[%s2831_s6 + $0x30] sm:$0xff] }
 0x78a   :  { %v756_v23 = vsel %vm753_vm5, %v755_v22, %v751_v7  ;;  %v2528_v43 = vsel %vm858_vm6, %v2229_v39, %v857_v42  ;;  %955 = vmatpush.msra.mxu2 %v55_v14  ;;  %v1018_v14 = vperm.slane %v2521_v28, 5 }
 0x78b   :  { %v758_v24 = vmul.f32 %v2225_v5, %v756_v23  ;;  %v898_v5 = vperm.slane %v2521_v28, 2  ;;  %v51_v23 = vld [vmem:[%s2831_s6 + $0x10] sm:$0xff] }
 0x78c   :  { %956 = vmatpush.msra.mxu2 %v54_v15 }
 0x78d   :  { %2107 = vmatmul.msk.f32.vlgmr.msrb.gmra.mxu0 %vm94_vm1, %v758_v24  ;;  %v50_v24 = vld [vmem:[%s2831_s6 + $0x8] sm:$0xff] }
 0x78e   :  { %957 = vmatpush.msra.mxu2 %v53_v17 }
 0x790   :  { %958 = vmatpush.msra.mxu2 %v52_v18 }
 0x792   :  { %959 = vmatpush.msra.mxu2 %v51_v23 }
 0x794   :  { %960 = vmatpush.msra.mxu2 %v50_v24 }
 0x796   :  { %961 = vmatpush.msra.mxu2 %v49_v25 }
 0x7ab   :  { %v648_v48 = vpop.f32.mrf.mxu2 }
 0x7ac   :  { %v652_v50 = vadd.f32 %v648_v48, %v462_v49 }
 0x7b5   :  { %v834_v32 = vpop.f32.mrf.mxu3 }
 0x7b6   :  { %v840_v33 = vadd.f32 %v834_v32, %v651_v30 }
 0x7b8   :  { %v843_v34 = vadd.f32 %v842_v31, %v840_v33 }
 0x7ba   :  { %v845_v35 = vadd.f32 %v843_v34, %v2388_v4 }
 0x7bc   :  { %v847_v36 = vsel %vm61_vm0, %v845_v35, 0.0 }
 0x7bd   :  { %848 = vadd.xlane.f32.xlu0 %v847_v36 }
 0x80a   :  { %v808_v37 = vpop.f32.mrf.mxu0 }
 0x80b   :  { %2109 = vmatmul.msk.f32.gmra.mxu3 %vm94_vm1, %v808_v37 }
 0x830   :  { %v849_v44 = vpop.xlane.xlu0 %848 }
 0x831   :  { %v860_v45 = vmul.f32 %v2528_v43, %v849_v44  ;;  %v938_v44 = vperm.slane %v2521_v28, 1 }
 0x833   :  { %v862_v4 = vsub.f32 %v845_v35, %v860_v45 }
 0x835   :  { %v864_v46 = vmul.f32 %v862_v4, %v862_v4 }
 0x837   :  { %v866_v47 = vsel %vm61_vm0, %v864_v46, 0.0 }
 0x838   :  { %867 = vadd.xlane.f32.xlu1 %v866_v47 }
 0x88e   :  { %v837_v51 = vpop.f32.mrf.mxu3 }
 0x88f   :  { %v841_v52 = vadd.f32 %v837_v51, %v652_v50 }
 0x891   :  { %v844_v53 = vadd.f32 %v842_v31, %v841_v52 }
 0x893   :  { %v846_v54 = vadd.f32 %v844_v53, %v2412_v11  ;;  %v44_v11 = vld [vmem:[%s2829_s4] sm:$0xff] }
 0x894   :  { %928 = vmatpush.msrb.mxu1 %v44_v11 }
 0x895   :  { %v850_v16 = vsel %vm61_vm0, %v846_v54, 0.0 }
 0x896   :  { %851 = vadd.xlane.f32.xlu2 %v850_v16 }
 0x8ab   :  { %v868_v58 = vpop.xlane.xlu1 %867 }
 0x8ac   :  { %v872_v59 = vmul.f32 %v868_v58, %v2528_v43  ;;  %v2117_v58 = vld [vmem:[%s2826_s1 + $0x38] sm:$0xff] }
 0x8ad   :  { %1072 = vmatpush.msra.mxu0 %v2117_v58 }
 0x8ae   :  { %v874_v60 = vadd.f32 1e-05, %v872_v59  ;;  %v2116_v59 = vld [vmem:[%s2826_s1 + $0x30] sm:$0xff] }
 0x8af   :  { %1073 = vmatpush.msra.mxu0 %v2116_v59 }
 0x8b0   :  { %2230 = vrsqrt.f32 %v874_v60  ;;  %vm882_vm8 = vweird.f32 %v874_v60 }
 0x8b6   :  { %v2231_v62 = vpop.eup %2230 }
 0x8b7   :  { %v877_v55 = vmul.f32 %v2231_v62, %v874_v60  ;;  %vm883_vm7 = vweird.f32 %v2231_v62  ;;  %v2115_v60 = vld [vmem:[%s2826_s1 + $0x28] sm:$0xff] }
 0x8b8   :  { %vm884_vm9 = vmor %vm882_vm8, %vm883_vm7  ;;  %1074 = vmatpush.msra.mxu0 %v2115_v60 }
 0x8b9   :  { %v878_v0 = vmul.f32 %v2231_v62, %v877_v55 }
 0x8bb   :  { %v879_v1 = vmul.f32 0.5, %v878_v0 }
 0x8bd   :  { %v880_v2 = vsub.f32 1.5, %v879_v1 }
 0x8bf   :  { %v881_v3 = vmul.f32 %v2231_v62, %v880_v2 }
 0x8c1   :  { %v885_v6 = vsel %vm884_vm9, %v2231_v62, %v881_v3  ;;  %v2114_v62 = vld [vmem:[%s2826_s1 + $0x20] sm:$0xff] }
 0x8c2   :  { %v896_v8 = vmul.f32 %v885_v6, %v862_v4  ;;  %1075 = vmatpush.msra.mxu0 %v2114_v62 }
 0x8c4   :  { %v899_v10 = vmul.f32 %v898_v5, %v896_v8 }
 0x8c6   :  { %v902_v12 = vadd.f32 %v901_v9, %v899_v10  ;;  %v1015_v10 = vperm.slane %v2521_v28, 4 }
 0x8c8   :  { %2110 = vmatmul.msk.f32.vlgmr.msrb.gmra.mxu1 %vm61_vm0, %v902_v12 }
 0x909   :  { %v852_v19 = vpop.xlane.xlu2 %851 }
 0x90a   :  { %v861_v20 = vmul.f32 %v2528_v43, %v852_v19 }
 0x90c   :  { %v863_v21 = vsub.f32 %v846_v54, %v861_v20 }
 0x90e   :  { %v865_v22 = vmul.f32 %v863_v21, %v863_v21 }
 0x910   :  { %v869_v7 = vsel %vm61_vm0, %v865_v22, 0.0 }
 0x911   :  { %870 = vadd.xlane.f32.xlu2 %v869_v7  ;;  %v2192_v7 = vld [vmem:[%s2827_s2 + $0x1] ss:$0 sm:$0xff] }
 0x945   :  { %v930_v27 = vpop.f32.mrf.mxu1 }
 0x946   :  { %v931_v29 = vadd.f32 %v2191_v26, %v930_v27 }
 0x948   :  { %v936_v30 = vmax.f32 %v931_v29, 0.0 }
 0x94a   :  { %2112 = vmatmul.msk.f32.vlgmr.msra.gmra.mxu2 %vm939_vm10, %v936_v30 }
 0x984   :  { %v871_v31 = vpop.xlane.xlu2 %870 }
 0x985   :  { %v873_v32 = vmul.f32 %v871_v31, %v2528_v43 }
 0x987   :  { %v875_v33 = vadd.f32 1e-05, %v873_v32 }
 0x989   :  { %2232 = vrsqrt.f32 %v875_v33  ;;  %vm892_vm12 = vweird.f32 %v875_v33 }
 0x98f   :  { %v2233_v34 = vpop.eup %2232 }
 0x990   :  { %v887_v35 = vmul.f32 %v2233_v34, %v875_v33  ;;  %vm893_vm11 = vweird.f32 %v2233_v34 }
 0x991   :  { %vm894_vm13 = vmor %vm892_vm12, %vm893_vm11 }
 0x992   :  { %v888_v36 = vmul.f32 %v2233_v34, %v887_v35 }
 0x994   :  { %v889_v37 = vmul.f32 0.5, %v888_v36 }
 0x996   :  { %v890_v38 = vsub.f32 1.5, %v889_v37 }
 0x998   :  { %v891_v39 = vmul.f32 %v2233_v34, %v890_v38 }
 0x99a   :  { %v895_v40 = vsel %vm894_vm13, %v2233_v34, %v891_v39 }
 0x99b   :  { %v897_v41 = vmul.f32 %v895_v40, %v863_v21 }
 0x99d   :  { %v900_v61 = vmul.f32 %v898_v5, %v897_v41 }
 0x99f   :  { %v903_v42 = vadd.f32 %v901_v9, %v900_v61 }
 0x9a1   :  { %2111 = vmatmul.msk.f32.gmra.mxu1 %vm61_vm0, %v903_v42 }
 0x9cd   :  { %v963_v45 = vpop.f32.mrf.mxu2 }
 0x9ce   :  { %v964_v4 = vadd.f32 %v963_v45, %v938_v44 }
 0x9d0   :  { %v969_v46 = vadd.f32 %v964_v4, %v902_v12 }
 0x9d2   :  { %v971_v47 = vsel %vm61_vm0, %v969_v46, 0.0 }
 0x9d3   :  { %972 = vadd.xlane.f32.xlu2 %v971_v47 }
 0xa1e   :  { %v933_v48 = vpop.f32.mrf.mxu1 }
 0xa1f   :  { %v934_v49 = vadd.f32 %v2191_v26, %v933_v48 }
 0xa21   :  { %v937_v50 = vmax.f32 %v934_v49, 0.0 }
 0xa23   :  { %2113 = vmatmul.msk.f32.gmra.mxu2 %vm939_vm10, %v937_v50 }
 0xa46   :  { %v973_v51 = vpop.xlane.xlu2 %972 }
 0xa47   :  { %v977_v52 = vmul.f32 %v973_v51, %v2528_v43 }
 0xa49   :  { %v979_v53 = vsub.f32 %v969_v46, %v977_v52 }
 0xa4b   :  { %v981_v54 = vmul.f32 %v979_v53, %v979_v53 }
 0xa4d   :  { %v983_v16 = vsel %vm61_vm0, %v981_v54, 0.0 }
 0xa4e   :  { %984 = vadd.xlane.f32.xlu0 %v983_v16 }
 0xaa6   :  { %v966_v56 = vpop.f32.mrf.mxu2 }
 0xaa7   :  { %v967_v57 = vadd.f32 %v966_v56, %v938_v44 }
 0xaa9   :  { %v970_v63 = vadd.f32 %v967_v57, %v903_v42 }
 0xaab   :  { %v974_v11 = vsel %vm61_vm0, %v970_v63, 0.0 }
 0xaac   :  { %975 = vadd.xlane.f32.xlu2 %v974_v11 }
 0xac1   :  { %v985_v55 = vpop.xlane.xlu0 %984 }
 0xac2   :  { %v989_v0 = vmul.f32 %v985_v55, %v2528_v43 }
 0xac4   :  { %v991_v1 = vadd.f32 1e-05, %v989_v0 }
 0xac6   :  { %2234 = vrsqrt.f32 %v991_v1  ;;  %vm999_vm15 = vweird.f32 %v991_v1 }
 0xacc   :  { %v2235_v2 = vpop.eup %2234 }
 0xacd   :  { %v994_v3 = vmul.f32 %v2235_v2, %v991_v1  ;;  %vm1000_vm14 = vweird.f32 %v2235_v2 }
 0xace   :  { %vm1001_vm2 = vmor %vm999_vm15, %vm1000_vm14 }
 0xacf   :  { %v995_v5 = vmul.f32 %v2235_v2, %v994_v3 }
 0xad1   :  { %v996_v6 = vmul.f32 0.5, %v995_v5 }
 0xad3   :  { %v997_v8 = vsub.f32 1.5, %v996_v6 }
 0xad5   :  { %v998_v9 = vmul.f32 %v2235_v2, %v997_v8 }
 0xad7   :  { %v1002_v12 = vsel %vm1001_vm2, %v2235_v2, %v998_v9 }
 0xad8   :  { %v1013_v13 = vmul.f32 %v1002_v12, %v979_v53 }
 0xada   :  { %v1016_v15 = vmul.f32 %v1015_v10, %v1013_v13 }
 0xadc   :  { %v2604_v17 = vadd.f32 %v1018_v14, %v1016_v15 }
 0xade   :  { %2137 = vmatmul.msk.f32.vlgmr.msra.gmra.mxu0 %vm61_vm0, %v2604_v17 }
 0xb1f   :  { %v976_v18 = vpop.xlane.xlu2 %975 }
 0xb20   :  { %v978_v19 = vmul.f32 %v976_v18, %v2528_v43 }
 0xb22   :  { %v980_v20 = vsub.f32 %v970_v63, %v978_v19 }
 0xb24   :  { %v982_v21 = vmul.f32 %v980_v20, %v980_v20 }
 0xb26   :  { %v986_v22 = vsel %vm61_vm0, %v982_v21, 0.0 }
 0xb27   :  { %987 = vadd.xlane.f32.xlu0 %v986_v22 }
 0xb5b   :  { %v1077_v23 = vpop.f32.mrf.mxu0 }
 0xb5c   :  { %v2613_v28 = vadd.f32 %v2192_v7, %v1077_v23 }
 0xb5e   :  { %1239 = vrot.lane.b32.xlu1 %v2613_v28, %s2311_s24  ;;  %1084 = vrot.lane.b32.xlu2 %v2613_v28, %s2309_s22 }
 0xb5f   :  { %1241 = vrot.lane.b32.xlu0 %v2613_v28, %s2310_s23 }
 0xb9a   :  { %v988_v24 = vpop.xlane.xlu0 %987 }
 0xb9b   :  { %v990_v25 = vmul.f32 %v988_v24, %v2528_v43 }
 0xb9d   :  { %v992_v26 = vadd.f32 1e-05, %v990_v25 }
 0xb9f   :  { %2236 = vrsqrt.f32 %v992_v26  ;;  %vm1009_vm4 = vweird.f32 %v992_v26 }
 0xba5   :  { %v2237_v27 = vpop.eup %2236 }
 0xba6   :  { %v1004_v29 = vmul.f32 %v2237_v27, %v992_v26  ;;  %vm1010_vm3 = vweird.f32 %v2237_v27 }
 0xba7   :  { %vm1011_vm5 = vmor %vm1009_vm4, %vm1010_vm3 }
 0xba8   :  { %v1005_v30 = vmul.f32 %v2237_v27, %v1004_v29 }
 0xbaa   :  { %v1006_v31 = vmul.f32 0.5, %v1005_v30 }
 0xbac   :  { %v1007_v32 = vsub.f32 1.5, %v1006_v31 }
 0xbae   :  { %v1008_v33 = vmul.f32 %v2237_v27, %v1007_v32 }
 0xbb0   :  { %v1012_v34 = vsel %vm1011_vm5, %v2237_v27, %v1008_v33 }
 0xbb1   :  { %v1014_v35 = vmul.f32 %v1012_v34, %v980_v20 }
 0xbb3   :  { %v1017_v36 = vmul.f32 %v1015_v10, %v1014_v35 }
 0xbb5   :  { %v2622_v37 = vadd.f32 %v1018_v14, %v1017_v36 }
 0xbb7   :  { %2138 = vmatmul.msk.f32.gmra.mxu0 %vm61_vm0, %v2622_v37 }
 0xbb8   :  { %v1085_v38 = vpop.permute.xlu2 %1084 }
 0xbb9   :  { %2139 = vmatpush.xpose.msk.msra.mxu3 %vm94_vm1, %v1085_v38 }
 0xbbc   :  { %2140 = vmatmul.msk.f32.vlgmr.msra.gmra.mxu3 %vm94_vm1, %v2613_v28 }
 0xbd0   :  { %v1240_v40 = vpop.permute.xlu1 %1239 }
 0xbd1   :  { %v1242_v39 = vpop.permute.xlu0 %1241 }
 0xbd2   :  { %2145 = vmatpush.xpose.msk.msrb.mxu3 %vm94_vm1, %v1242_v39  ;;  %v2119_v39 = vld [vmem:[%s2828_s3 + $0x20] sm:$0xff] }
 0xbd5   :  { %2146 = vmatmul.msk.f32.vlgmr.msrb.gmra.mxu3 %vm94_vm1, %v1240_v40  ;;  %v2120_v40 = vld [vmem:[%s2828_s3 + $0x28] sm:$0xff] }
 0xbd6   :  { %1418 = vmatpush.msra.mxu3 %v2120_v40 }
 0xc34   :  { %v1080_v41 = vpop.f32.mrf.mxu0 }
 0xc35   :  { %v2631_v61 = vadd.f32 %v2192_v7, %v1080_v41 }
 0xc37   :  { %1111 = vrot.lane.b32.xlu0 %v2631_v61, %s2309_s22 }
 0xc3f   :  { %v1107_v42 = vpop.f32.mrf.mxu3 }
 0xc40   :  { %v1137_v44 = vmul.f32 0.35355338, %v1107_v42 }
 0xc42   :  { %v1139_v45 = vsel %vm94_vm1, %v1137_v44, -inf }
 0xc43   :  { %1140 = vmax.xlane.f32.xlu2 %v1139_v45 }
 0xc58   :  { %v1264_v4 = vpop.f32.mrf.mxu3 }
 0xc59   :  { %v1295_v46 = vmul.f32 0.35355338, %v1264_v4 }
 0xc5b   :  { %v1297_v47 = vsel %vm94_vm1, %v1295_v46, -inf }
 0xc5c   :  { %1298 = vmax.xlane.f32.xlu1 %v1297_v47 }
 0xc75   :  { %1187 = vrot.lane.b32.xlu1 %v2613_v28, %s2308_s21 }
 0xc7d   :  { %1457 = vrot.lane.b32.xlu1 %v2613_v28, %s2312_s28 }
 0xca9   :  { %v1112_v48 = vpop.permute.xlu0 %1111 }
 0xcaa   :  { %2141 = vmatpush.xpose.msk.msra.mxu1 %vm94_vm1, %v1112_v48 }
 0xcad   :  { %2142 = vmatmul.msk.f32.vlgmr.msra.gmra.mxu1 %vm94_vm1, %v2631_v61 }
 0xcb6   :  { %v1141_v49 = vpop.xlane.xlu2 %1140 }
 0xcb7   :  { %v1145_v50 = vsub.f32 %v1137_v44, %v1141_v49 }
 0xcb9   :  { %v1147_v51 = vmul.f32 1.442695, %v1145_v50 }
 0xcbb   :  { %2238 = vpow2.f32 %v1147_v51 }
 0xcc1   :  { %v2239_v52 = vpop.eup %2238 }
 0xcc2   :  { %v1151_v53 = vsel %vm94_vm1, %v2239_v52, 0.0 }
 0xcc3   :  { %1152 = vadd.xlane.f32.xlu0 %v1151_v53 }
 0xccf   :  { %v1299_v54 = vpop.xlane.xlu1 %1298 }
 0xcd0   :  { %v1303_v16 = vsub.f32 %v1295_v46, %v1299_v54 }
 0xcd2   :  { %v1305_v56 = vmul.f32 1.442695, %v1303_v16 }
 0xcd4   :  { %2240 = vpow2.f32 %v1305_v56 }
 0xcd7   :  { %1345 = vrot.lane.b32.xlu0 %v2613_v28, %s2313_s29 }
 0xcda   :  { %v2241_v57 = vpop.eup %2240 }
 0xcdb   :  { %v1309_v63 = vsel %vm94_vm1, %v2241_v57, 0.0 }
 0xcdc   :  { %1310 = vadd.xlane.f32.xlu2 %v1309_v63 }
 0xcdf   :  { %1267 = vrot.lane.b32.xlu0 %v2631_v61, %s2311_s24 }
 0xce7   :  { %v1188_v11 = vpop.permute.xlu1 %1187 }
 0xce8   :  { %1208 = vmatpush.msrb.mxu2 %v1188_v11 }
 0xcef   :  { %v1458_v14 = vpop.permute.xlu1 %1457 }
 0xcf4   :  { %1269 = vrot.lane.b32.xlu2 %v2631_v61, %s2310_s23 }
 0xcfc   :  { %1455 = vrot.lane.b32.xlu2 %v2613_v28, %s2314_s30 }
 0xd04   :  { %1213 = vrot.lane.b32.xlu2 %v2631_v61, %s2308_s21 }
 0xd2a   :  { %v1134_v58 = vpop.f32.mrf.mxu1 }
 0xd2b   :  { %v1138_v59 = vmul.f32 0.35355338, %v1134_v58 }
 0xd2d   :  { %v1142_v60 = vsel %vm94_vm1, %v1138_v59, -inf }
 0xd2e   :  { %1143 = vmax.xlane.f32.xlu0 %v1142_v60 }
 0xd36   :  { %v1153_v62 = vpop.xlane.xlu0 %1152 }
 0xd37   :  { %2242 = vrcp.f32 %v1153_v62  ;;  %v1168_v2 = vand.u32 2147483648, %v1153_v62  ;;  %v1166_v5 = vand.u32 2147483647, %v1153_v62  ;;  %vm1162_vm7 = vweird.f32 %v1153_v62 }
 0xd39   :  { %v1169_v8 = vor.u32 1.1754944e-38, %v1168_v2  ;;  %vm1167_vm9 = vcmp.eq.f32.partialorder %v1166_v5, 8.507059e+37 }
 0xd3d   :  { %v2243_v55 = vpop.eup %2242 }
 0xd3e   :  { %v1158_v0 = vmul.f32 %v2243_v55, %v1153_v62  ;;  %vm1163_vm6 = vweird.f32 %v2243_v55 }
 0xd3f   :  { %vm1164_vm8 = vmor %vm1162_vm7, %vm1163_vm6 }
 0xd40   :  { %v1159_v1 = vsub.f32 1.0, %v1158_v0 }
 0xd42   :  { %v1160_v3 = vmul.f32 %v2243_v55, %v1159_v1 }
 0xd44   :  { %v1161_v6 = vadd.f32 %v2243_v55, %v1160_v3 }
 0xd46   :  { %v1165_v9 = vsel %vm1164_vm8, %v2243_v55, %v1161_v6 }
 0xd47   :  { %v1170_v10 = vsel %vm1167_vm9, %v1169_v8, %v1165_v9 }
 0xd48   :  { %v1185_v12 = vmul.f32 %v2239_v52, %v1170_v10 }
 0xd49   :  { %v1346_v13 = vpop.permute.xlu0 %1345 }
 0xd4a   :  { %2143 = vmatmul.msk.f32.vlgmr.msrb.gmra.mxu2 %vm94_vm1, %v1185_v12 }
 0xd4b   :  { %1366 = vmatpush.msra.mxu2 %v1346_v13 }
 0xd4d   :  { %2155 = vmatpush.xpose.msk.msrb.mxu2 %vm94_vm1, %v1458_v14 }
 0xd4f   :  { %v1311_v15 = vpop.xlane.xlu2 %1310 }
 0xd50   :  { %2244 = vrcp.f32 %v1311_v15  ;;  %v1326_v22 = vand.u32 2147483648, %v1311_v15  ;;  %v1324_v24 = vand.u32 2147483647, %v1311_v15  ;;  %vm1320_vm12 = vweird.f32 %v1311_v15 }
 0xd51   :  { %v1268_v7 = vpop.permute.xlu0 %1267 }
 0xd52   :  { %v1327_v26 = vor.u32 1.1754944e-38, %v1326_v22  ;;  %vm1325_vm14 = vcmp.eq.f32.partialorder %v1324_v24, 8.507059e+37 }
 0xd56   :  { %v2245_v18 = vpop.eup %2244 }
 0xd57   :  { %v1316_v19 = vmul.f32 %v2245_v18, %v1311_v15  ;;  %v1270_v20 = vpop.permute.xlu2 %1269  ;;  %vm1321_vm11 = vweird.f32 %v2245_v18 }
 0xd58   :  { %2147 = vmatpush.xpose.msk.msrb.mxu1 %vm94_vm1, %v1270_v20  ;;  %vm1322_vm13 = vmor %vm1320_vm12, %vm1321_vm11 }
 0xd59   :  { %v1317_v21 = vsub.f32 1.0, %v1316_v19 }
 0xd5b   :  { %v1318_v23 = vmul.f32 %v2245_v18, %v1317_v21  ;;  %2148 = vmatmul.msk.f32.vlgmr.msrb.gmra.mxu1 %vm94_vm1, %v1268_v7 }
 0xd5c   :  { %1447 = vmatpush.msra.mxu1 %v2119_v39 }
 0xd5d   :  { %v1319_v25 = vadd.f32 %v2245_v18, %v1318_v23 }
 0xd5f   :  { %v1323_v27 = vsel %vm1322_vm13, %v2245_v18, %v1319_v25  ;;  %v1456_v29 = vpop.permute.xlu2 %1455 }
 0xd60   :  { %v1328_v30 = vsel %vm1325_vm14, %v1327_v26, %v1323_v27 }
 0xd61   :  { %v1343_v31 = vmul.f32 %v2241_v57, %v1328_v30 }
 0xd63   :  { %2149 = vmatmul.msk.f32.vlgmr.msra.gmra.mxu2 %vm94_vm1, %v1343_v31 }
 0xd67   :  { %v1214_v32 = vpop.permute.xlu2 %1213 }
 0xd68   :  { %1234 = vmatpush.msrb.mxu0 %v1214_v32 }
 0xd6b   :  { %2156 = vmatmul.msk.f32.vlgmr.msrb.gmra.mxu2 %vm94_vm1, %v1456_v29 }
 0xda1   :  { %v1144_v33 = vpop.xlane.xlu0 %1143 }
 0xda2   :  { %v1146_v34 = vsub.f32 %v1138_v59, %v1144_v33 }
 0xda4   :  { %v1149_v35 = vmul.f32 1.442695, %v1146_v34 }
 0xda6   :  { %2246 = vpow2.f32 %v1149_v35 }
 0xdac   :  { %v2247_v36 = vpop.eup %2246 }
 0xdad   :  { %v1154_v38 = vsel %vm94_vm1, %v2247_v36, 0.0 }
 0xdae   :  { %1155 = vadd.xlane.f32.xlu1 %v1154_v38 }
 0xdc7   :  { %1371 = vrot.lane.b32.xlu1 %v2631_v61, %s2313_s29 }
 0xdcd   :  { %v1210_v41 = vpop.f32.mrf.mxu2 }
 0xdce   :  { %2153 = vmatmul.msk.f32.vlgmr.msra.gmra.mxu1 %vm94_vm1, %v1210_v41 }
 0xdcf   :  { %1561 = vrot.lane.b32.xlu1 %v2613_v28, %s2317_s14 }
 0xdd8   :  { %v1292_v42 = vpop.f32.mrf.mxu1 }
 0xdd9   :  { %v1296_v44 = vmul.f32 0.35355338, %v1292_v42 }
 0xddb   :  { %v1300_v45 = vsel %vm94_vm1, %v1296_v44, -inf }
 0xddc   :  { %1301 = vmax.xlane.f32.xlu2 %v1300_v45 }
 0xde6   :  { %v1368_v4 = vpop.f32.mrf.mxu2 }
 0xde7   :  { %2151 = vmatmul.msk.f32.vlgmr.msra.gmra.mxu3 %vm94_vm1, %v1368_v4 }
 0xdee   :  { %v1480_v46 = vpop.f32.mrf.mxu2 }
 0xdef   :  { %v1511_v47 = vmul.f32 0.35355338, %v1480_v46  ;;  %v2121_v46 = vld [vmem:[%s2828_s3 + $0x30] sm:$0xff] }
 0xdf0   :  { %1634 = vmatpush.msrb.mxu3 %v2121_v46 }
 0xdf1   :  { %v1513_v48 = vsel %vm94_vm1, %v1511_v47, -inf }
 0xdf2   :  { %1514 = vmax.xlane.f32.xlu0 %v1513_v48 }
 0xdf4   :  { %1485 = vrot.lane.b32.xlu2 %v2631_v61, %s2312_s28 }
 0xdfc   :  { %1674 = vrot.lane.b32.xlu2 %v2631_v61, %s2315_s10 }
 0xe06   :  { %1483 = vrot.lane.b32.xlu0 %v2631_v61, %s2314_s30 }
 0xe0e   :  { %1646 = vrot.lane.b32.xlu0 %v2613_v28, %s2315_s10 }
 0xe21   :  { %v1156_v49 = vpop.xlane.xlu1 %1155 }
 0xe22   :  { %2248 = vrcp.f32 %v1156_v49  ;;  %v1182_v53 = vand.u32 2147483648, %v1156_v49  ;;  %v1180_v16 = vand.u32 2147483647, %v1156_v49  ;;  %vm1176_vm2 = vweird.f32 %v1156_v49 }
 0xe24   :  { %v1183_v57 = vor.u32 1.1754944e-38, %v1182_v53  ;;  %vm1181_vm4 = vcmp.eq.f32.partialorder %v1180_v16, 8.507059e+37 }
 0xe28   :  { %v2249_v50 = vpop.eup %2248 }
 0xe29   :  { %v1172_v51 = vmul.f32 %v2249_v50, %v1156_v49  ;;  %vm1177_vm15 = vweird.f32 %v2249_v50 }
 0xe2a   :  { %vm1178_vm3 = vmor %vm1176_vm2, %vm1177_vm15 }
 0xe2b   :  { %v1173_v52 = vsub.f32 1.0, %v1172_v51 }
 0xe2d   :  { %v1174_v54 = vmul.f32 %v2249_v50, %v1173_v52 }
 0xe2f   :  { %v1175_v56 = vadd.f32 %v2249_v50, %v1174_v54 }
 0xe31   :  { %v1179_v63 = vsel %vm1178_vm3, %v2249_v50, %v1175_v56 }
 0xe32   :  { %v1184_v11 = vsel %vm1181_vm4, %v1183_v57, %v1179_v63 }
 0xe33   :  { %v1186_v58 = vmul.f32 %v2247_v36, %v1184_v11 }
 0xe35   :  { %2144 = vmatmul.msk.f32.vlgmr.msrb.gmra.mxu0 %vm94_vm1, %v1186_v58 }
 0xe39   :  { %v1372_v59 = vpop.permute.xlu1 %1371 }
 0xe3a   :  { %1392 = vmatpush.msra.mxu0 %v1372_v59 }
 0xe41   :  { %v1562_v60 = vpop.permute.xlu1 %1561 }
 0xe42   :  { %1582 = vmatpush.msra.mxu2 %v1562_v60 }
 0xe4b   :  { %v2702_v4 = vpop.f32.mrf.mxu1 }
 0xe4f   :  { %v1302_v62 = vpop.xlane.xlu2 %1301 }
 0xe50   :  { %v1304_v55 = vsub.f32 %v1296_v44, %v1302_v62 }
 0xe52   :  { %v1307_v0 = vmul.f32 1.442695, %v1304_v55 }
 0xe54   :  { %2250 = vpow2.f32 %v1307_v0 }
 0xe57   :  { %v1486_v1 = vpop.permute.xlu2 %1485 }
 0xe58   :  { %2157 = vmatpush.xpose.msk.msrb.mxu0 %vm94_vm1, %v1486_v1 }
 0xe5a   :  { %v2251_v2 = vpop.eup %2250 }
 0xe5b   :  { %v1312_v3 = vsel %vm94_vm1, %v2251_v2, 0.0 }
 0xe5c   :  { %1313 = vadd.xlane.f32.xlu1 %v1312_v3 }
 0xe5f   :  { %v1675_v5 = vpop.permute.xlu2 %1674 }
 0xe60   :  { %2165 = vmatpush.xpose.msk.msrb.mxu2 %vm94_vm1, %v1675_v5 }
 0xe65   :  { %v1515_v6 = vpop.xlane.xlu0 %1514 }
 0xe66   :  { %v1519_v8 = vsub.f32 %v1511_v47, %v1515_v6 }
 0xe68   :  { %v1521_v9 = vmul.f32 1.442695, %v1519_v8 }
 0xe6a   :  { %2252 = vpow2.f32 %v1521_v9 }
 0xe70   :  { %v2253_v10 = vpop.eup %2252 }
 0xe71   :  { %v1525_v12 = vsel %vm94_vm1, %v2253_v10, 0.0 }
 0xe72   :  { %1526 = vadd.xlane.f32.xlu0 %v1525_v12 }
 0xe75   :  { %1644 = vrot.lane.b32.xlu1 %v2613_v28, %s2316_s11 }
 0xe78   :  { %v1484_v13 = vpop.permute.xlu0 %1483 }
 0xe80   :  { %v1647_v14 = vpop.permute.xlu0 %1646 }
 0xe81   :  { %2163 = vmatpush.xpose.msk.msrb.mxu1 %vm94_vm1, %v1647_v14 }
 0xe86   :  { %1672 = vrot.lane.b32.xlu0 %v2631_v61, %s2316_s11 }
 0xeb2   :  { %v1236_v15 = vpop.f32.mrf.mxu0 }
 0xeb3   :  { %2154 = vmatmul.msk.f32.gmra.mxu1 %vm94_vm1, %v1236_v15 }
 0xecf   :  { %v1314_v18 = vpop.xlane.xlu1 %1313 }
 0xed0   :  { %2254 = vrcp.f32 %v1314_v18  ;;  %v1340_v22 = vand.u32 2147483648, %v1314_v18  ;;  %v1338_v23 = vand.u32 2147483647, %v1314_v18  ;;  %vm1334_vm6 = vweird.f32 %v1314_v18 }
 0xed2   :  { %v1341_v25 = vor.u32 1.1754944e-38, %v1340_v22  ;;  %vm1339_vm8 = vcmp.eq.f32.partialorder %v1338_v23, 8.507059e+37 }
 0xed6   :  { %v2255_v19 = vpop.eup %2254 }
 0xed7   :  { %v1330_v20 = vmul.f32 %v2255_v19, %v1314_v18  ;;  %vm1335_vm5 = vweird.f32 %v2255_v19 }
 0xed8   :  { %vm1336_vm7 = vmor %vm1334_vm6, %vm1335_vm5 }
 0xed9   :  { %v1331_v21 = vsub.f32 1.0, %v1330_v20 }
 0xedb   :  { %v1332_v7 = vmul.f32 %v2255_v19, %v1331_v21 }
 0xedd   :  { %v1333_v24 = vadd.f32 %v2255_v19, %v1332_v7 }
 0xedf   :  { %v1337_v26 = vsel %vm1336_vm7, %v2255_v19, %v1333_v24 }
 0xee0   :  { %v1342_v27 = vsel %vm1339_vm8, %v1341_v25, %v1337_v26 }
 0xee1   :  { %v1344_v29 = vmul.f32 %v2251_v2, %v1342_v27 }
 0xee3   :  { %2150 = vmatmul.msk.f32.vlgmr.msra.gmra.mxu0 %vm94_vm1, %v1344_v29 }
 0xee5   :  { %v1527_v30 = vpop.xlane.xlu0 %1526 }
 0xee6   :  { %2256 = vrcp.f32 %v1527_v30  ;;  %v1542_v35 = vand.u32 2147483648, %v1527_v30  ;;  %v1540_v38 = vand.u32 2147483647, %v1527_v30  ;;  %vm1536_vm11 = vweird.f32 %v1527_v30 }
 0xee7   :  { %v1645_v31 = vpop.permute.xlu1 %1644 }
 0xee8   :  { %2164 = vmatmul.msk.f32.vlgmr.msrb.gmra.mxu1 %vm94_vm1, %v1645_v31  ;;  %v1543_v40 = vor.u32 1.1754944e-38, %v1542_v35  ;;  %vm1541_vm13 = vcmp.eq.f32.partialorder %v1540_v38, 8.507059e+37 }
 0xeeb   :  { %2158 = vmatmul.msk.f32.vlgmr.msrb.gmra.mxu0 %vm94_vm1, %v1484_v13 }
 0xeec   :  { %v2257_v32 = vpop.eup %2256 }
 0xeed   :  { %v1532_v33 = vmul.f32 %v2257_v32, %v1527_v30  ;;  %vm1537_vm9 = vweird.f32 %v2257_v32 }
 0xeee   :  { %vm1538_vm12 = vmor %vm1536_vm11, %vm1537_vm9 }
 0xeef   :  { %v1533_v34 = vsub.f32 1.0, %v1532_v33 }
 0xef1   :  { %v1534_v36 = vmul.f32 %v2257_v32, %v1533_v34 }
 0xef3   :  { %v1535_v39 = vadd.f32 %v2257_v32, %v1534_v36 }
 0xef5   :  { %v1539_v41 = vsel %vm1538_vm12, %v2257_v32, %v1535_v39 }
 0xef6   :  { %v1544_v42 = vsel %vm1541_vm13, %v1543_v40, %v1539_v41 }
 0xef7   :  { %v1559_v44 = vmul.f32 %v2253_v10, %v1544_v42 }
 0xef8   :  { %v1673_v45 = vpop.permute.xlu0 %1672 }
 0xef9   :  { %2159 = vmatmul.msk.f32.vlgmr.msra.gmra.mxu2 %vm94_vm1, %v1559_v44 }
 0xf01   :  { %2166 = vmatmul.msk.f32.vlgmr.msrb.gmra.mxu2 %vm94_vm1, %v1673_v45 }
 0xf30   :  { %v2707_v47 = vpop.f32.mrf.mxu1 }
 0xf60   :  { %v1394_v48 = vpop.f32.mrf.mxu0 }
 0xf61   :  { %2152 = vmatmul.msk.f32.gmra.mxu3 %vm94_vm1, %v1394_v48 }
 0xf65   :  { %v1669_v49 = vpop.f32.mrf.mxu1 }
 0xf66   :  { %v1700_v50 = vmul.f32 0.35355338, %v1669_v49 }
 0xf68   :  { %v1508_v51 = vpop.f32.mrf.mxu0  ;;  %v1702_v52 = vsel %vm94_vm1, %v1700_v50, -inf }
 0xf69   :  { %v1512_v53 = vmul.f32 0.35355338, %v1508_v51  ;;  %1703 = vmax.xlane.f32.xlu1 %v1702_v52 }
 0xf6b   :  { %v1516_v54 = vsel %vm94_vm1, %v1512_v53, -inf }
 0xf6c   :  { %1517 = vmax.xlane.f32.xlu2 %v1516_v54  ;;  %v2122_v54 = vld [vmem:[%s2828_s3 + $0x38] sm:$0xff] }
 0xf6d   :  { %1823 = vmatpush.msra.mxu2 %v2122_v54 }
 0xf7c   :  { %v1584_v16 = vpop.f32.mrf.mxu2 }
 0xf7d   :  { %2161 = vmatmul.msk.f32.vlgmr.msrb.gmra.mxu3 %vm94_vm1, %v1584_v16 }
 0xf84   :  { %v1697_v56 = vpop.f32.mrf.mxu2 }
 0xf85   :  { %v1701_v57 = vmul.f32 0.35355338, %v1697_v56 }
 0xf87   :  { %v1705_v63 = vsel %vm94_vm1, %v1701_v57, -inf }
 0xf88   :  { %1706 = vmax.xlane.f32.xlu0 %v1705_v63  ;;  %v1420_v63 = vpop.f32.mrf.mxu3 }
 0xfdc   :  { %v1704_v11 = vpop.xlane.xlu1 %1703 }
 0xfdd   :  { %v1708_v58 = vsub.f32 %v1700_v50, %v1704_v11 }
 0xfdf   :  { %v1710_v59 = vmul.f32 1.442695, %v1708_v58  ;;  %v1518_v60 = vpop.xlane.xlu2 %1517 }
 0xfe0   :  { %v1520_v62 = vsub.f32 %v1512_v53, %v1518_v60  ;;  %v1450_v60 = vadd.f32 %v2702_v4, %v1420_v63 }
 0xfe1   :  { %2258 = vpow2.f32 %v1710_v59  ;;  %v2735_v59 = vld [vmem:[%s2832_s7 + $0x8] sm:$0x3f]  ;;  %s2320_s7 = smov [#allocation2]  }
 0xfe2   :  { %v1523_v55 = vmul.f32 1.442695, %v1520_v62 }
 0xfe4   :  { %2260 = vpow2.f32 %v1523_v55  ;;  %v1423_v11 = vpop.f32.mrf.mxu3  ;;  %v1833_v55 = vperm.slane %v2735_v59, 0 }
 0xfe7   :  { %v2259_v0 = vpop.eup %2258 }
 0xfe8   :  { %v1714_v1 = vsel %vm94_vm1, %v2259_v0, 0.0 }
 0xfe9   :  { %1715 = vadd.xlane.f32.xlu1 %v1714_v1 }
 0xfea   :  { %v2261_v2 = vpop.eup %2260 }
 0xfeb   :  { %v1528_v3 = vsel %vm94_vm1, %v2261_v2, 0.0 }
 0xfec   :  { %1529 = vadd.xlane.f32.xlu2 %v1528_v3 }
 0xffb   :  { %v1707_v5 = vpop.xlane.xlu0 %1706 }
 0xffc   :  { %v1709_v6 = vsub.f32 %v1701_v57, %v1707_v5 }
 0xffe   :  { %v1712_v8 = vmul.f32 1.442695, %v1709_v6 }
0x1000   :  { %2262 = vpow2.f32 %v1712_v8  ;;  %v1636_v58 = vpop.f32.mrf.mxu3  ;;  %v1453_v8 = vadd.f32 %v2707_v47, %v1423_v11 }
0x1001   :  { %v1642_v62 = vadd.f32 %v1636_v58, %v1450_v60 }
0x1002   :  { %1750 = vrot.lane.b32.xlu1 %v2613_v28, %s2318_s15 }
0x1004   :  { %1587 = vrot.lane.b32.xlu2 %v2631_v61, %s2317_s14  ;;  %s2062_s14 = sshll.u32 %s2320_s7, 4  ;;  %s2063_s14 = int_to_ptr.vmem [resolvable:$true] %s2062_s14 }
0x1006   :  { %v2263_v9 = vpop.eup %2262 }
0x1007   :  { %v1717_v10 = vsel %vm94_vm1, %v2263_v9, 0.0 }
0x1008   :  { %1718 = vadd.xlane.f32.xlu0 %v1717_v10 }
0x101c   :  { %1776 = vrot.lane.b32.xlu0 %v2631_v61, %s2318_s15 }
0x105c   :  { %v1716_v12 = vpop.xlane.xlu1 %1715 }
0x105d   :  { %2264 = vrcp.f32 %v1716_v12  ;;  %v1731_v29 = vand.u32 2147483648, %v1716_v12  ;;  %vm1725_vm5 = vweird.f32 %v1716_v12  ;;  %v1729_v31 = vand.u32 2147483647, %v1716_v12 }
0x105f   :  { %v1530_v13 = vpop.xlane.xlu2 %1529  ;;  %v1732_v34 = vor.u32 1.1754944e-38, %v1731_v29  ;;  %vm1730_vm7 = vcmp.eq.f32.partialorder %v1729_v31, 8.507059e+37 }
0x1060   :  { %2266 = vrcp.f32 %v1530_v13  ;;  %v1556_v22 = vand.u32 2147483648, %v1530_v13  ;;  %v1554_v24 = vand.u32 2147483647, %v1530_v13  ;;  %vm1550_vm15 = vweird.f32 %v1530_v13 }
0x1062   :  { %v1557_v61 = vor.u32 1.1754944e-38, %v1556_v22  ;;  %vm1555_vm4 = vcmp.eq.f32.partialorder %v1554_v24, 8.507059e+37  ;;  %v2124_v24 = vld [vmem:[%s2829_s4 + $0x28] sm:$0xff] }
0x1063   :  { %v2265_v14 = vpop.eup %2264 }
0x1064   :  { %v1721_v15 = vmul.f32 %v2265_v14, %v1716_v12  ;;  %vm1726_vm3 = vweird.f32 %v2265_v14 }
0x1065   :  { %vm1727_vm6 = vmor %vm1725_vm5, %vm1726_vm3 }
0x1066   :  { %v2267_v18 = vpop.eup %2266  ;;  %v1722_v19 = vsub.f32 1.0, %v1721_v15 }
0x1067   :  { %v1546_v20 = vmul.f32 %v2267_v18, %v1530_v13  ;;  %v1588_v28 = vpop.permute.xlu2 %1587  ;;  %vm1551_vm14 = vweird.f32 %v2267_v18 }
0x1068   :  { %1608 = vmatpush.msra.mxu0 %v1588_v28  ;;  %v1723_v7 = vmul.f32 %v2265_v14, %v1722_v19  ;;  %vm1552_vm2 = vmor %vm1550_vm15, %vm1551_vm14 }
0x1069   :  { %v1547_v21 = vsub.f32 1.0, %v1546_v20 }
0x106a   :  { %v1724_v26 = vadd.f32 %v2265_v14, %v1723_v7 }
0x106b   :  { %v1548_v23 = vmul.f32 %v2267_v18, %v1547_v21 }
0x106c   :  { %v1728_v33 = vsel %vm1727_vm6, %v2265_v14, %v1724_v26 }
0x106d   :  { %v1549_v25 = vadd.f32 %v2267_v18, %v1548_v23  ;;  %v1733_v36 = vsel %vm1730_vm7, %v1732_v34, %v1728_v33  ;;  %v2125_v23 = vld [vmem:[%s2829_s4 + $0x30] sm:$0xff]  ;;  %v2135_v34 = vld [vmem:[%s2831_s6 + $0x78] sm:$0xff] }
0x106e   :  { %v1748_v38 = vmul.f32 %v2259_v0, %v1733_v36  ;;  %1937 = vmatpush.msra.mxu3 %v2135_v34 }
0x106f   :  { %v1553_v27 = vsel %vm1552_vm2, %v2267_v18, %v1549_v25  ;;  %v2123_v25 = vld [vmem:[%s2829_s4 + $0x20] sm:$0xff] }
0x1070   :  { %v1558_v30 = vsel %vm1555_vm4, %v1557_v61, %v1553_v27 }
0x1071   :  { %v1560_v32 = vmul.f32 %v2261_v2, %v1558_v30 }
0x1073   :  { %2160 = vmatmul.msk.f32.vlgmr.msra.gmra.mxu0 %vm94_vm1, %v1560_v32 }
0x1074   :  { %v1751_v35 = vpop.permute.xlu1 %1750 }
0x1075   :  { %1771 = vmatpush.msrb.mxu0 %v1751_v35  ;;  %v2134_v35 = vld [vmem:[%s2831_s6 + $0x70] sm:$0xff] }
0x1076   :  { %1938 = vmatpush.msra.mxu3 %v2134_v35 }
0x107b   :  { %v1719_v39 = vpop.xlane.xlu0 %1718  ;;  %2167 = vmatmul.msk.f32.vlgmr.msrb.gmra.mxu0 %vm94_vm1, %v1748_v38  ;;  %v2133_v38 = vld [vmem:[%s2831_s6 + $0x68] sm:$0xff] }
0x107c   :  { %2268 = vrcp.f32 %v1719_v39  ;;  %v1745_v44 = vand.u32 2147483648, %v1719_v39  ;;  %v1743_v46 = vand.u32 2147483647, %v1719_v39  ;;  %vm1739_vm9 = vweird.f32 %v1719_v39  ;;  %1939 = vmatpush.msra.mxu3 %v2133_v38 }
0x107e   :  { %v1746_v49 = vor.u32 1.1754944e-38, %v1745_v44  ;;  %vm1744_vm12 = vcmp.eq.f32.partialorder %v1743_v46, 8.507059e+37  ;;  %v2132_v44 = vld [vmem:[%s2831_s6 + $0x60] sm:$0xff]  ;;  %v1885_v46 = vperm.slane %v2735_v59, 3 }
0x107f   :  { %1940 = vmatpush.msra.mxu3 %v2132_v44 }
0x1082   :  { %v2269_v40 = vpop.eup %2268 }
0x1083   :  { %v1735_v41 = vmul.f32 %v2269_v40, %v1719_v39  ;;  %vm1740_vm8 = vweird.f32 %v2269_v40  ;;  %v1882_v39 = vperm.slane %v2735_v59, 2 }
0x1084   :  { %vm1741_vm11 = vmor %vm1739_vm9, %vm1740_vm8 }
0x1085   :  { %v1736_v42 = vsub.f32 1.0, %v1735_v41 }
0x1087   :  { %v1737_v45 = vmul.f32 %v2269_v40, %v1736_v42 }
0x1089   :  { %v1738_v48 = vadd.f32 %v2269_v40, %v1737_v45 }
0x108b   :  { %v1742_v50 = vsel %vm1741_vm11, %v2269_v40, %v1738_v48 }
0x108c   :  { %v1747_v51 = vsel %vm1744_vm12, %v1746_v49, %v1742_v50  ;;  %v2131_v49 = vld [vmem:[%s2831_s6 + $0x58] sm:$0xff] }
0x108d   :  { %v1749_v52 = vmul.f32 %v2263_v9, %v1747_v51  ;;  %1941 = vmatpush.msra.mxu3 %v2131_v49 }
0x108e   :  { %v1777_v53 = vpop.permute.xlu0 %1776 }
0x108f   :  { %1797 = vmatpush.msra.mxu1 %v1777_v53 }
0x1090   :  { %2168 = vmatmul.msk.f32.vlgmr.msra.gmra.mxu1 %vm94_vm1, %v1749_v52 }
0x10f0   :  { %v1610_v16 = vpop.f32.mrf.mxu0 }
0x10f1   :  { %2162 = vmatmul.msk.f32.gmra.mxu3 %vm94_vm1, %v1610_v16 }
0x10f8   :  { %v1773_v56 = vpop.f32.mrf.mxu0 }
0x10f9   :  { %2169 = vmatmul.msk.f32.vlgmr.msra.gmra.mxu2 %vm94_vm1, %v1773_v56 }
0x110d   :  { %v1799_v57 = vpop.f32.mrf.mxu1 }
0x110e   :  { %2170 = vmatmul.msk.f32.gmra.mxu2 %vm94_vm1, %v1799_v57 }
0x1174   :  { %v1639_v6 = vpop.f32.mrf.mxu3 }
0x1175   :  { %v1643_v9 = vadd.f32 %v1639_v6, %v1453_v8 }
0x117c   :  { %v1825_v0 = vpop.f32.mrf.mxu2 }
0x117d   :  { %v1831_v1 = vadd.f32 %v1825_v0, %v1642_v62  ;;  %v2130_v62 = vld [vmem:[%s2831_s6 + $0x50] sm:$0xff]  ;;  %v2128_v0 = vld [vmem:[%s2831_s6 + $0x40] sm:$0xff] }
0x117e   :  { %1942 = vmatpush.msra.mxu3 %v2130_v62 }
0x117f   :  { %v1834_v2 = vadd.f32 %v1833_v55, %v1831_v1  ;;  %v2193_v1 = vld [vmem:[%s2830_s5 + $0x1] ss:$0 sm:$0xff] }
0x1181   :  { %v1836_v3 = vadd.f32 %v1834_v2, %v2604_v17 }
0x1183   :  { %v1838_v5 = vsel %vm61_vm0, %v1836_v3, 0.0 }
0x1184   :  { %1839 = vadd.xlane.f32.xlu2 %v1838_v5 }
0x1191   :  { %v1828_v10 = vpop.f32.mrf.mxu2 }
0x1192   :  { %v1832_v12 = vadd.f32 %v1828_v10, %v1643_v9  ;;  %v1922_v10 = vperm.slane %v2735_v59, 1 }
0x1194   :  { %v1835_v13 = vadd.f32 %v1833_v55, %v1832_v12  ;;  %v2129_v55 = vld [vmem:[%s2831_s6 + $0x48] sm:$0xff] }
0x1195   :  { %1943 = vmatpush.msra.mxu3 %v2129_v55 }
0x1196   :  { %v1837_v4 = vadd.f32 %v1835_v13, %v2622_v37  ;;  %v2126_v37 = vld [vmem:[%s2829_s4 + $0x38] sm:$0xff] }
0x1197   :  { %1909 = vmatpush.msra.mxu0 %v2126_v37  ;;  %1944 = vmatpush.msra.mxu3 %v2128_v0 }
0x1198   :  { %v1841_v14 = vsel %vm61_vm0, %v1837_v4, 0.0 }
0x1199   :  { %1842 = vadd.xlane.f32.xlu0 %v1841_v14  ;;  %1910 = vmatpush.msra.mxu0 %v2125_v23 }
0x119b   :  { %1911 = vmatpush.msra.mxu0 %v2124_v24 }
0x119d   :  { %1912 = vmatpush.msra.mxu0 %v2123_v25 }
0x11f7   :  { %v1840_v15 = vpop.xlane.xlu2 %1839 }
0x11f8   :  { %v1844_v18 = vmul.f32 %v1840_v15, %v2528_v43 }
0x11fa   :  { %v1846_v19 = vsub.f32 %v1836_v3, %v1844_v18 }
0x11fc   :  { %v1848_v17 = vmul.f32 %v1846_v19, %v1846_v19 }
0x11fe   :  { %v1850_v20 = vsel %vm61_vm0, %v1848_v17, 0.0 }
0x11ff   :  { %1851 = vadd.xlane.f32.xlu1 %v1850_v20 }
0x120c   :  { %v1843_v28 = vpop.xlane.xlu0 %1842 }
0x120d   :  { %v1845_v47 = vmul.f32 %v1843_v28, %v2528_v43 }
0x120f   :  { %v1847_v21 = vsub.f32 %v1837_v4, %v1845_v47 }
0x1211   :  { %v1849_v22 = vmul.f32 %v1847_v21, %v1847_v21 }
0x1213   :  { %v1853_v7 = vsel %vm61_vm0, %v1849_v22, 0.0 }
0x1214   :  { %1854 = vadd.xlane.f32.xlu2 %v1853_v7 }
0x1272   :  { %v1852_v61 = vpop.xlane.xlu1 %1851 }
0x1273   :  { %v1856_v26 = vmul.f32 %v1852_v61, %v2528_v43 }
0x1275   :  { %v1858_v27 = vadd.f32 1e-05, %v1856_v26 }
0x1277   :  { %2270 = vrsqrt.f32 %v1858_v27  ;;  %vm1866_vm13 = vweird.f32 %v1858_v27 }
0x127d   :  { %v2271_v29 = vpop.eup %2270 }
0x127e   :  { %v1861_v30 = vmul.f32 %v2271_v29, %v1858_v27  ;;  %vm1867_vm1 = vweird.f32 %v2271_v29 }
0x127f   :  { %vm1868_vm14 = vmor %vm1866_vm13, %vm1867_vm1 }
0x1280   :  { %v1862_v31 = vmul.f32 %v2271_v29, %v1861_v30 }
0x1282   :  { %v1863_v32 = vmul.f32 0.5, %v1862_v31 }
0x1284   :  { %v1864_v33 = vsub.f32 1.5, %v1863_v32 }
0x1286   :  { %v1865_v36 = vmul.f32 %v2271_v29, %v1864_v33 }
0x1287   :  { %v1855_v40 = vpop.xlane.xlu2 %1854 }
0x1288   :  { %v1869_v41 = vsel %vm1868_vm14, %v2271_v29, %v1865_v36  ;;  %v1857_v42 = vmul.f32 %v1855_v40, %v2528_v43  ;;  %v1998_v36 = vperm.slane %v2735_v59, 4 }
0x1289   :  { %v1880_v45 = vmul.f32 %v1869_v41, %v1846_v19  ;;  %v2001_v41 = vperm.slane %v2735_v59, 5 }
0x128a   :  { %v1859_v48 = vadd.f32 1e-05, %v1857_v42 }
0x128b   :  { %v1883_v50 = vmul.f32 %v1882_v39, %v1880_v45 }
0x128c   :  { %2272 = vrsqrt.f32 %v1859_v48  ;;  %vm1876_vm2 = vweird.f32 %v1859_v48 }
0x128d   :  { %v1886_v51 = vadd.f32 %v1885_v46, %v1883_v50 }
0x128f   :  { %2171 = vmatmul.msk.f32.vlgmr.msra.gmra.mxu0 %vm61_vm0, %v1886_v51 }
0x1292   :  { %v2273_v52 = vpop.eup %2272 }
0x1293   :  { %v1871_v53 = vmul.f32 %v2273_v52, %v1859_v48  ;;  %vm1877_vm15 = vweird.f32 %v2273_v52 }
0x1294   :  { %vm1878_vm3 = vmor %vm1876_vm2, %vm1877_vm15 }
0x1295   :  { %v1872_v54 = vmul.f32 %v2273_v52, %v1871_v53 }
0x1297   :  { %v1873_v16 = vmul.f32 0.5, %v1872_v54 }
0x1299   :  { %v1874_v56 = vsub.f32 1.5, %v1873_v16 }
0x129b   :  { %v1875_v57 = vmul.f32 %v2273_v52, %v1874_v56 }
0x129d   :  { %v1879_v63 = vsel %vm1878_vm3, %v2273_v52, %v1875_v57 }
0x129e   :  { %v1881_v11 = vmul.f32 %v1879_v63, %v1847_v21 }
0x12a0   :  { %v1884_v58 = vmul.f32 %v1882_v39, %v1881_v11 }
0x12a2   :  { %v1887_v60 = vadd.f32 %v1885_v46, %v1884_v58 }
0x12a4   :  { %2172 = vmatmul.msk.f32.gmra.mxu0 %vm61_vm0, %v1887_v60 }
0x130c   :  { %v1914_v2 = vpop.f32.mrf.mxu0 }
0x130d   :  { %v1915_v3 = vadd.f32 %v2193_v1, %v1914_v2 }
0x130f   :  { %v1920_v5 = vmax.f32 %v1915_v3, 0.0 }
0x1311   :  { %2173 = vmatmul.msk.f32.vlgmr.msra.gmra.mxu3 %vm939_vm10, %v1920_v5 }
0x1321   :  { %v1917_v6 = vpop.f32.mrf.mxu0 }
0x1322   :  { %v1918_v8 = vadd.f32 %v2193_v1, %v1917_v6 }
0x1324   :  { %v1921_v9 = vmax.f32 %v1918_v8, 0.0 }
0x1326   :  { %2174 = vmatmul.msk.f32.gmra.mxu3 %vm939_vm10, %v1921_v9 }
0x1394   :  { %v1946_v12 = vpop.f32.mrf.mxu3 }
0x1395   :  { %v1947_v13 = vadd.f32 %v1946_v12, %v1922_v10 }
0x1397   :  { %v1952_v4 = vadd.f32 %v1947_v13, %v1886_v51 }
0x1399   :  { %v1954_v14 = vsel %vm61_vm0, %v1952_v4, 0.0 }
0x139a   :  { %1955 = vadd.xlane.f32.xlu0 %v1954_v14 }
0x13a9   :  { %v1949_v15 = vpop.f32.mrf.mxu3 }
0x13aa   :  { %v1950_v18 = vadd.f32 %v1949_v15, %v1922_v10  ;;  %v2194_v15 = vld [vmem:[%s2833_s8] ss:$0 sm:$0xff] }
0x13ac   :  { %v1953_v19 = vadd.f32 %v1950_v18, %v1887_v60 }
0x13ae   :  { %v1957_v17 = vsel %vm61_vm0, %v1953_v19, 0.0 }
0x13af   :  { %1958 = vadd.xlane.f32.xlu2 %v1957_v17 }
0x140d   :  { %v1956_v20 = vpop.xlane.xlu0 %1955 }
0x140e   :  { %v1960_v28 = vmul.f32 %v1956_v20, %v2528_v43 }
0x1410   :  { %v1962_v47 = vsub.f32 %v1952_v4, %v1960_v28  ;;  %v2195_v28 = vld [vmem:[%s2833_s8 + $0x1] ss:$0 sm:$0xff] }
0x1412   :  { %v1964_v21 = vmul.f32 %v1962_v47, %v1962_v47 }
0x1414   :  { %v1966_v22 = vsel %vm61_vm0, %v1964_v21, 0.0 }
0x1415   :  { %1967 = vadd.xlane.f32.xlu1 %v1966_v22 }
0x1422   :  { %v1959_v7 = vpop.xlane.xlu2 %1958 }
0x1423   :  { %v1961_v37 = vmul.f32 %v1959_v7, %v2528_v43 }
0x1425   :  { %v1963_v23 = vsub.f32 %v1953_v19, %v1961_v37 }
0x1427   :  { %v1965_v24 = vmul.f32 %v1963_v23, %v1963_v23 }
0x1429   :  { %v1969_v25 = vsel %vm61_vm0, %v1965_v24, 0.0 }
0x142a   :  { %1970 = vadd.xlane.f32.xlu0 %v1969_v25 }
0x1488   :  { %v1968_v61 = vpop.xlane.xlu1 %1967 }
0x1489   :  { %v1972_v26 = vmul.f32 %v1968_v61, %v2528_v43 }
0x148b   :  { %v1974_v27 = vadd.f32 1e-05, %v1972_v26 }
0x148d   :  { %2274 = vrsqrt.f32 %v1974_v27  ;;  %vm1982_vm4 = vweird.f32 %v1974_v27 }
0x1493   :  { %v2275_v29 = vpop.eup %2274 }
0x1494   :  { %v1977_v30 = vmul.f32 %v2275_v29, %v1974_v27  ;;  %vm1983_vm10 = vweird.f32 %v2275_v29 }
0x1495   :  { %vm1984_vm5 = vmor %vm1982_vm4, %vm1983_vm10 }
0x1496   :  { %v1978_v31 = vmul.f32 %v2275_v29, %v1977_v30 }
0x1498   :  { %v1979_v32 = vmul.f32 0.5, %v1978_v31 }
0x149a   :  { %v1980_v33 = vsub.f32 1.5, %v1979_v32 }
0x149c   :  { %v1981_v34 = vmul.f32 %v2275_v29, %v1980_v33 }
0x149d   :  { %v1971_v35 = vpop.xlane.xlu0 %1970 }
0x149e   :  { %v1973_v38 = vmul.f32 %v1971_v35, %v2528_v43  ;;  %v1985_v39 = vsel %vm1984_vm5, %v2275_v29, %v1981_v34 }
0x149f   :  { %v1996_v40 = vmul.f32 %v1985_v39, %v1962_v47 }
0x14a0   :  { %v1975_v42 = vadd.f32 1e-05, %v1973_v38 }
0x14a1   :  { %v1999_v44 = vmul.f32 %v1998_v36, %v1996_v40 }
0x14a2   :  { %2276 = vrsqrt.f32 %v1975_v42  ;;  %vm1992_vm7 = vweird.f32 %v1975_v42 }
0x14a3   :  { %v2002_v45 = vadd.f32 %v2001_v41, %v1999_v44 }
0x14a5   :  { %v2006_v46 = vsel %vm61_vm0, %v2002_v45, 0.0 }
0x14a6   :  { %2007 = vadd.xlane.f32.xlu2 %v2006_v46 }
0x14a8   :  { %v2277_v48 = vpop.eup %2276 }
0x14a9   :  { %v1987_v49 = vmul.f32 %v2277_v48, %v1975_v42  ;;  %vm1993_vm6 = vweird.f32 %v2277_v48 }
0x14aa   :  { %vm1994_vm8 = vmor %vm1992_vm7, %vm1993_vm6 }
0x14ab   :  { %v1988_v50 = vmul.f32 %v2277_v48, %v1987_v49 }
0x14ad   :  { %v1989_v51 = vmul.f32 0.5, %v1988_v50 }
0x14af   :  { %v1990_v52 = vsub.f32 1.5, %v1989_v51 }
0x14b1   :  { %v1991_v53 = vmul.f32 %v2277_v48, %v1990_v52 }
0x14b3   :  { %v1995_v54 = vsel %vm1994_vm8, %v2277_v48, %v1991_v53 }
0x14b4   :  { %v1997_v16 = vmul.f32 %v1995_v54, %v1963_v23 }
0x14b6   :  { %v2000_v56 = vmul.f32 %v1998_v36, %v1997_v16 }
0x14b8   :  { %v2003_v59 = vadd.f32 %v2001_v41, %v2000_v56 }
0x14ba   :  { %v2009_v57 = vsel %vm61_vm0, %v2003_v59, 0.0 }
0x14bb   :  { %2010 = vadd.xlane.f32.xlu1 %v2009_v57 }
0x1519   :  { %v2008_v63 = vpop.xlane.xlu2 %2007 }
0x151a   :  { %v2012_v11 = vmul.f32 %v2008_v63, %v2528_v43 }
0x151c   :  { %v2014_v58 = vsub.f32 %v2002_v45, %v2012_v11 }
0x151e   :  { %v2016_v60 = vmul.f32 %v2014_v58, %v2014_v58 }
0x1520   :  { %v2018_v62 = vsel %vm61_vm0, %v2016_v60, 0.0 }
0x1521   :  { %2019 = vadd.xlane.f32.xlu0 %v2018_v62 }
0x152e   :  { %v2011_v55 = vpop.xlane.xlu1 %2010 }
0x152f   :  { %v2013_v0 = vmul.f32 %v2011_v55, %v2528_v43 }
0x1531   :  { %v2015_v1 = vsub.f32 %v2003_v59, %v2013_v0 }
0x1533   :  { %v2017_v2 = vmul.f32 %v2015_v1, %v2015_v1 }
0x1535   :  { %v2021_v3 = vsel %vm61_vm0, %v2017_v2, 0.0 }
0x1536   :  { %2022 = vadd.xlane.f32.xlu2 %v2021_v3 }
0x1594   :  { %v2020_v5 = vpop.xlane.xlu0 %2019 }
0x1595   :  { %v2024_v6 = vmul.f32 %v2020_v5, %v2528_v43 }
0x1597   :  { %v2026_v8 = vadd.f32 1e-05, %v2024_v6 }
0x1599   :  { %2278 = vrsqrt.f32 %v2026_v8  ;;  %vm2034_vm11 = vweird.f32 %v2026_v8 }
0x159f   :  { %v2279_v9 = vpop.eup %2278 }
0x15a0   :  { %v2029_v10 = vmul.f32 %v2279_v9, %v2026_v8  ;;  %vm2035_vm9 = vweird.f32 %v2279_v9 }
0x15a1   :  { %vm2036_vm12 = vmor %vm2034_vm11, %vm2035_vm9 }
0x15a2   :  { %v2030_v12 = vmul.f32 %v2279_v9, %v2029_v10 }
0x15a4   :  { %v2031_v13 = vmul.f32 0.5, %v2030_v12 }
0x15a6   :  { %v2032_v4 = vsub.f32 1.5, %v2031_v13 }
0x15a8   :  { %v2033_v14 = vmul.f32 %v2279_v9, %v2032_v4 }
0x15a9   :  { %v2023_v18 = vpop.xlane.xlu2 %2022 }
0x15aa   :  { %v2037_v19 = vsel %vm2036_vm12, %v2279_v9, %v2033_v14  ;;  %v2025_v17 = vmul.f32 %v2023_v18, %v2528_v43 }
0x15ab   :  { %v2048_v20 = vmul.f32 %v2037_v19, %v2014_v58 }
0x15ac   :  { %v2027_v47 = vadd.f32 1e-05, %v2025_v17 }
0x15ad   :  { %v2051_v21 = vmul.f32 %v2194_v15, %v2048_v20 }
0x15ae   :  { %2280 = vrsqrt.f32 %v2027_v47  ;;  %vm2044_vm13 = vweird.f32 %v2027_v47 }
0x15af   :  { %v2054_v22 = vadd.f32 %v2195_v28, %v2051_v21 }
0x15b1   :  { %2056 = vst.msk [vmem:[#allocation2] sm:$0xff] %vm61_vm0, %v2054_v22 }
0x15b4   :  { %v2281_v7 = vpop.eup %2280 }
0x15b5   :  { %v2039_v37 = vmul.f32 %v2281_v7, %v2027_v47  ;;  %vm2045_vm1 = vweird.f32 %v2281_v7 }
0x15b6   :  { %vm2046_vm14 = vmor %vm2044_vm13, %vm2045_vm1 }
0x15b7   :  { %v2040_v23 = vmul.f32 %v2281_v7, %v2039_v37 }
0x15b9   :  { %v2041_v24 = vmul.f32 0.5, %v2040_v23 }
0x15bb   :  { %v2042_v25 = vsub.f32 1.5, %v2041_v24 }
0x15bd   :  { %v2043_v61 = vmul.f32 %v2281_v7, %v2042_v25 }
0x15bf   :  { %v2047_v43 = vsel %vm2046_vm14, %v2281_v7, %v2043_v61 }
0x15c0   :  { %v2049_v26 = vmul.f32 %v2047_v43, %v2015_v1 }
0x15c2   :  { %v2052_v27 = vmul.f32 %v2194_v15, %v2049_v26 }
0x15c4   :  { %v2055_v29 = vadd.f32 %v2195_v28, %v2052_v27 }
0x15c6   :  { %2057 = vst.msk [vmem:[#allocation2 + $0x8] sm:$0xff] %vm61_vm0, %v2055_v29 }
0x15c7   :  { %2070 = dma.vmem_to_hbm [thread:$0]  %s2063_s14, 256, %s2065_s27, [#allocation3], %s2321_s12, %s2321_s12, %s2322_s13  }
0x15c8   :  { %2306 = dma.done.wait [#allocation3], 256  }
0x15c9   :  { %2307 = vsyncadd [#allocation3], 4294967040 }
0x15ca   :  { %2075 = vsyncpa [#allocation3], 1 }

</bundles_post_ra>
